<compile_context>
chip_gen: v5e
topology: v5e:2x2
jax: 0.10.0
libtpu: 0.0.40
codegen_flags: <defaults>
</compile_context>

<pallas_src>
import jax
import jax.numpy as jnp
from jax.experimental import pallas as pl
from jax.experimental.pallas import tpu as pltpu

LANE = 128


def _round_up(x, m):
    return ((x + m - 1) // m) * m


def _pick_t_blk(T, max_blk=32):
    """Largest divisor of T that is <= max_blk (time steps per grid step)."""
    best = 1
    for cand in range(1, min(T, max_blk) + 1):
        if T % cand == 0:
            best = cand
    return best


# ----------------------------------------------------------------------------
# Fused bidirectional GRU kernel
# ----------------------------------------------------------------------------

def _bigru_kernel(x_ref, wih_ref, whh_ref, bih_ref, bhh_ref, h0_ref,
                  out_ref, hT_ref, h_scr):
    """grid = (direction, time_block). One grid step runs T_BLK GRU steps."""
    _, T_BLK, B, _I = x_ref.shape
    HP = h_scr.shape[-1]
    tb = pl.program_id(1)

    @pl.when(tb == 0)
    def _():
        h_scr[...] = h0_ref[0]

    # Fused input projection for the whole time block: one bf16 MXU matmul.
    x_blk = x_ref[0].reshape(T_BLK * B, x_ref.shape[-1])          # bf16
    gi = jnp.dot(x_blk, wih_ref[0], preferred_element_type=jnp.float32)
    gi = (gi + bih_ref[0]).reshape(T_BLK, B, 3 * HP)              # fp32

    whh = whh_ref[0]                                              # (HP, 3HP) bf16
    bhh = jnp.broadcast_to(bhh_ref[0], (B, 3 * HP))               # hoisted broadcast

    h = h_scr[...]                                                # (B, HP) fp32
    for i in range(T_BLK):                                        # unrolled recurrence
        gh = jnp.dot(h.astype(jnp.bfloat16), whh,
                     preferred_element_type=jnp.float32) + bhh
        gi_t = gi[i]
        # PyTorch GRU gate order: r, z, n ; gate slices are 128-aligned views.
        r = jax.nn.sigmoid(gi_t[:, :HP] + gh[:, :HP])
        z = jax.nn.sigmoid(gi_t[:, HP:2 * HP] + gh[:, HP:2 * HP])
        n = jnp.tanh(gi_t[:, 2 * HP:] + r * gh[:, 2 * HP:])
        h = (1.0 - z) * n + z * h
        out_ref[0, i] = h

    h_scr[...] = h

    @pl.when(tb == pl.num_programs(1) - 1)
    def _():
        hT_ref[0] = h                                             # written once


def bigru_layer(x_dir, w_ih, w_hh, b_ih, b_hh, h0, t_blk):
    """x_dir: (2, T, B, I) bf16 (dir 1 is time-reversed).  Returns
    out: (2, T, B, HP) fp32 (dir 1 in processing order), hT: (2, B, HP)."""
    _, T, B, I = x_dir.shape
    HP = h0.shape[-1]
    nT = T // t_blk
    return pl.pallas_call(
        _bigru_kernel,
        out_shape=(jax.ShapeDtypeStruct((2, T, B, HP), jnp.float32),
                   jax.ShapeDtypeStruct((2, B, HP), jnp.float32)),
        grid=(2, nT),
        in_specs=[pl.BlockSpec((1, t_blk, B, I), lambda d, t: (d, t, 0, 0)),
                  pl.BlockSpec((1, I, 3 * HP), lambda d, t: (d, 0, 0)),
                  pl.BlockSpec((1, HP, 3 * HP), lambda d, t: (d, 0, 0)),
                  pl.BlockSpec((1, 1, 3 * HP), lambda d, t: (d, 0, 0)),
                  pl.BlockSpec((1, 1, 3 * HP), lambda d, t: (d, 0, 0)),
                  pl.BlockSpec((1, B, HP), lambda d, t: (d, 0, 0))],
        out_specs=(pl.BlockSpec((1, t_blk, B, HP), lambda d, t: (d, t, 0, 0)),
                   pl.BlockSpec((1, B, HP), lambda d, t: (d, 0, 0))),
        scratch_shapes=[pltpu.VMEM((B, HP), jnp.float32)],
        compiler_params=pltpu.CompilerParams(
            dimension_semantics=("parallel", "arbitrary")),
    )(x_dir, w_ih, w_hh, b_ih, b_hh, h0)


# ----------------------------------------------------------------------------
# Fused Parse_Graph_Module (all hops in one kernel, whole batch at once)
# ----------------------------------------------------------------------------

def _parse_gnn_kernel(node_ref, g_ref, w1_ref, b1_ref, w2_ref, b2_ref,
                      won_ref, woh_ref, bo_ref, out_ref):
    B, S, HP = node_ref.shape
    hops = w1_ref.shape[0]
    g = g_ref[...]                                   # (B,S,S) bf16, pre-normalized
    node = node_ref[...]                             # (B,S,HP) fp32

    for hop in range(hops):
        agg1 = jnp.einsum('bij,bjh->bih', g, node.astype(jnp.bfloat16),
                          preferred_element_type=jnp.float32)
        h1 = jnp.maximum(
            jnp.dot(agg1.reshape(B * S, HP).astype(jnp.bfloat16), w1_ref[hop],
                    preferred_element_type=jnp.float32) + b1_ref[hop], 0.0)
        agg2 = jnp.einsum('bij,bjh->bih', g,
                          h1.reshape(B, S, HP).astype(jnp.bfloat16),
                          preferred_element_type=jnp.float32)
        h2 = jnp.maximum(
            jnp.dot(agg2.reshape(B * S, HP).astype(jnp.bfloat16), w2_ref[hop],
                    preferred_element_type=jnp.float32) + b2_ref[hop], 0.0)
        # concat([node, h2]) @ Wo  ==  node @ Wo_top + h2 @ Wo_bot
        node = jnp.tanh(
            jnp.dot(node.reshape(B * S, HP).astype(jnp.bfloat16), won_ref[hop],
                    preferred_element_type=jnp.float32)
            + jnp.dot(h2.astype(jnp.bfloat16), woh_ref[hop],
                      preferred_element_type=jnp.float32)
            + bo_ref[hop]).reshape(B, S, HP)

    out_ref[...] = node


def parse_gnn_fused(node, g_norm, gnn_params):
    B, S, HP = node.shape
    return pl.pallas_call(
        _parse_gnn_kernel,
        out_shape=jax.ShapeDtypeStruct((B, S, HP), jnp.float32),
    )(node, g_norm, gnn_params["w1"], gnn_params["b1"],
      gnn_params["w2"], gnn_params["b2"],
      gnn_params["won"], gnn_params["woh"], gnn_params["bo"])


# ----------------------------------------------------------------------------
# Parameter padding / stacking (done once, plain JAX)
# ----------------------------------------------------------------------------

def _pad_last(a, n):
    pad = n - a.shape[-1]
    if pad == 0:
        return a
    return jnp.concatenate(
        [a, jnp.zeros(a.shape[:-1] + (pad,), a.dtype)], axis=-1)


def _pad_axis0(a, n):
    pad = n - a.shape[0]
    if pad == 0:
        return a
    return jnp.concatenate(
        [a, jnp.zeros((pad,) + a.shape[1:], a.dtype)], axis=0)


def _pad_gate_cols(w, H, HP):
    """(..., 3H) -> (..., 3HP): each gate block zero-padded from H to HP lanes."""
    return jnp.concatenate(
        [_pad_last(w[..., g * H:(g + 1) * H], HP) for g in range(3)], axis=-1)


def prepare_params(params):
    cfg = params["config"]
    H, n_layers = cfg["hidden_size"], cfg["n_layers"]
    HP = _round_up(H, LANE)
    out = {"config": dict(cfg, padded_hidden=HP),
           "embedding1": params["embedding1"],
           "embedding2": params["embedding2"]}

    gru = []
    for layer in range(n_layers):
        w_ih, w_hh, b_ih, b_hh = [], [], [], []
        for d in range(2):
            p = params["gru"][(layer, d)]
            w_ih.append(_pad_gate_cols(p["w_ih"], H, HP))
            w_hh.append(_pad_axis0(_pad_gate_cols(p["w_hh"], H, HP), HP))
            b_ih.append(_pad_gate_cols(p["b_ih"], H, HP))
            b_hh.append(_pad_gate_cols(p["b_hh"], H, HP))
        gru.append(dict(
            w_ih=jnp.stack(w_ih).astype(jnp.bfloat16),      # (2, I, 3HP)
            w_hh=jnp.stack(w_hh).astype(jnp.bfloat16),      # (2, HP, 3HP)
            b_ih=jnp.stack(b_ih).astype(jnp.float32),       # (2, 1, 3HP)
            b_hh=jnp.stack(b_hh).astype(jnp.float32)))      # (2, 1, 3HP)
    out["gru"] = gru

    def sq(w):                                              # (h_in, H) -> (HP, HP)
        return _pad_axis0(_pad_last(w, HP), HP)

    gp = params["parse_gnn"]
    out["parse_gnn"] = dict(
        w1=jnp.stack([sq(p["w1"]) for p in gp]).astype(jnp.bfloat16),
        w2=jnp.stack([sq(p["w2"]) for p in gp]).astype(jnp.bfloat16),
        won=jnp.stack([sq(p["wo"][:H]) for p in gp]).astype(jnp.bfloat16),
        woh=jnp.stack([sq(p["wo"][H:]) for p in gp]).astype(jnp.bfloat16),
        b1=jnp.stack([_pad_last(p["b1"], HP) for p in gp]).astype(jnp.float32),
        b2=jnp.stack([_pad_last(p["b2"], HP) for p in gp]).astype(jnp.float32),
        bo=jnp.stack([_pad_last(p["bo"], HP) for p in gp]).astype(jnp.float32))
    return out


# ----------------------------------------------------------------------------
# Module forward (glue in plain JAX)
# ----------------------------------------------------------------------------

def graph_based_multi_encoder_forward(prepped, input1_var, input2_var,
                                      input_length, parse_graph, hidden=None):
    cfg = prepped["config"]
    H, HP = cfg["hidden_size"], cfg["padded_hidden"]
    n_layers = cfg["n_layers"]

    # Embedding lookups (embedding2 has padding_idx=0 -> row 0 is zeros)
    emb1 = jnp.take(prepped["embedding1"], input1_var, axis=0)   # (T, B, E1)
    emb2 = jnp.take(prepped["embedding2"], input2_var, axis=0)   # (T, B, E2)
    x = jnp.concatenate([emb1, emb2], axis=2)                    # (T, B, E1+E2)
    # em_dropout / GRU dropout: eval mode -> identity

    T, B, _ = x.shape
    t_blk = _pick_t_blk(T)
    # TODO(synk): pack_padded_sequence masking for variable lengths is not
    # implemented; this demo uses full-length sequences so packing is a no-op.

    if hidden is None:
        hidden_p = jnp.zeros((n_layers * 2, B, HP), jnp.float32)
    else:
        hidden_p = _pad_last(hidden.astype(jnp.float32), HP)

    final_h = []
    out_fwd = out_bwd = None
    for layer in range(n_layers):
        p = prepped["gru"][layer]
        # direction 0: forward time order; direction 1: reversed time order
        x_dir = jnp.stack([x, jnp.flip(x, axis=0)], axis=0).astype(jnp.bfloat16)
        h0 = hidden_p[2 * layer:2 * layer + 2]                   # (2, B, HP)
        out, hT = bigru_layer(x_dir, p["w_ih"], p["w_hh"],
                              p["b_ih"], p["b_hh"], h0, t_blk)
        out_fwd = out[0]                                         # (T, B, HP)
        out_bwd = jnp.flip(out[1], axis=0)                       # back to original order
        final_h.append(hT[0, :, :H])
        final_h.append(hT[1, :, :H])
        if layer + 1 < n_layers:
            x = jnp.concatenate([out_fwd[..., :H], out_bwd[..., :H]], axis=-1)

    pade_hidden = jnp.stack(final_h, axis=0)                     # (2*n_layers, B, H)

    # fwd + bwd sum (padding lanes stay zero), batch-major for the GNN
    node = jnp.transpose(out_fwd + out_bwd, (1, 0, 2))           # (B, T, HP)

    # Row-normalized adjacency with self loops, computed ONCE for all hops.
    g = parse_graph[:, 2].astype(jnp.float32)                    # (B, T, T)
    g = g + jnp.eye(T, dtype=jnp.float32)[None]
    g = g / jnp.sum(g, axis=-1, keepdims=True)
    g = g.astype(jnp.bfloat16)

    node = parse_gnn_fused(node, g, prepped["parse_gnn"])        # all hops fused

    pade_outputs = jnp.transpose(node, (1, 0, 2))[:, :, :H]      # (T, B, H)
    return pade_outputs, pade_hidden


# ----------------------------------------------------------------------------
# Deterministic parameter initialization (real / unpadded sizes)
# ----------------------------------------------------------------------------

def init_params(key, input1_size, input2_size, e1, e2, H, n_layers, hop_size):
    keys = iter(jax.random.split(key, 64))

    def nrm(shape, scale=0.1):
        return (scale * jax.random.normal(next(keys), shape)).astype(jnp.float32)

    params = {"config": dict(hidden_size=H, n_layers=n_layers, hop_size=hop_size)}
    params["embedding1"] = nrm((input1_size, e1))
    emb2 = nrm((input2_size, e2))
    params["embedding2"] = emb2.at[0].set(0.0)          # padding_idx=0

    gru = {}
    for layer in range(n_layers):
        in_size = e1 + e2 if layer == 0 else 2 * H
        for d in range(2):
            gru[(layer, d)] = dict(
                w_ih=nrm((in_size, 3 * H)),
                w_hh=nrm((H, 3 * H)),
                b_ih=nrm((1, 3 * H)),
                b_hh=nrm((1, 3 * H)),
            )
    params["gru"] = gru

    params["parse_gnn"] = [
        dict(w1=nrm((H, H)), b1=nrm((1, H)),
             w2=nrm((H, H)), b2=nrm((1, H)),
             wo=nrm((2 * H, H)), bo=nrm((1, H)))
        for _ in range(hop_size)
    ]
    return params


# ----------------------------------------------------------------------------

if __name__ == "__main__":
    key = jax.random.PRNGKey(0)
    input1_size, input2_size = 50, 20
    e1, e2, H = 32, 16, 32
    n_layers, hop_size = 2, 2
    T, B = 8, 2

    kp, k1, k2, kg = jax.random.split(key, 4)
    params = init_params(kp, input1_size, input2_size, e1, e2, H,
                         n_layers, hop_size)
    prepped = prepare_params(params)

    input1_var = jax.random.randint(k1, (T, B), 1, input1_size, dtype=jnp.int32)
    input2_var = jax.random.randint(k2, (T, B), 1, input2_size, dtype=jnp.int32)
    input_length = [T] * B      # full-length sequences (see TODO above)
    parse_graph = jax.random.bernoulli(kg, 0.3, (B, 3, T, T)).astype(jnp.int32)

    outputs, hidden_out = graph_based_multi_encoder_forward(
        prepped, input1_var, input2_var, input_length, parse_graph)
    jax.block_until_ready((outputs, hidden_out))

    assert outputs.shape == (T, B, H)
    assert hidden_out.shape == (2 * n_layers, B, H)
    assert bool(jnp.all(jnp.isfinite(outputs)))
    assert bool(jnp.all(jnp.isfinite(hidden_out)))
    print("KERNEL_OK")
</pallas_src>

<mosaic_0001>
module attributes {stable_mosaic.version = 11 : i64} {
  func.func @_bigru_kernel(%arg0: i32, %arg1: i32, %arg2: memref<1x8x2x48xbf16, #tpu.memory_space<vmem>>, %arg3: memref<1x48x384xbf16, #tpu.memory_space<vmem>>, %arg4: memref<1x128x384xbf16, #tpu.memory_space<vmem>>, %arg5: memref<1x1x384xf32, #tpu.memory_space<vmem>>, %arg6: memref<1x1x384xf32, #tpu.memory_space<vmem>>, %arg7: memref<1x2x128xf32, #tpu.memory_space<vmem>>, %arg8: memref<1x8x2x128xf32, #tpu.memory_space<vmem>>, %arg9: memref<1x2x128xf32, #tpu.memory_space<vmem>>, %arg10: memref<2x128xf32, #tpu.memory_space<vmem>>) attributes {dimension_semantics = [#tpu.dimension_semantics<parallel>, #tpu.dimension_semantics<arbitrary>], iteration_bounds = array<i64: 2, 1>, scalar_prefetch = 0 : i64, scratch_operands = 1 : i64, tpu.core_type = #tpu.core_type<tc>, window_params = [{transform_indices = @transform_0, window_bounds = array<i64: 1, 8, 2, 48>}, {transform_indices = @transform_1, window_bounds = array<i64: 1, 48, 384>}, {transform_indices = @transform_2, window_bounds = array<i64: 1, 128, 384>}, {transform_indices = @transform_3, window_bounds = array<i64: 1, 1, 384>}, {transform_indices = @transform_4, window_bounds = array<i64: 1, 1, 384>}, {transform_indices = @transform_5, window_bounds = array<i64: 1, 2, 128>}, {transform_indices = @transform_6, window_bounds = array<i64: 1, 8, 2, 128>}, {transform_indices = @transform_7, window_bounds = array<i64: 1, 2, 128>}]} {
    %c0_i32 = arith.constant 0 : i32
    %0 = arith.cmpi eq, %arg1, %c0_i32 : i32
    %1 = arith.extui %0 : i1 to i32
    %c0_i32_0 = arith.constant 0 : i32
    %2 = arith.cmpi ne, %1, %c0_i32_0 : i32
    scf.if %2 {
      %c0_79 = arith.constant 0 : index
      %c0_80 = arith.constant 0 : index
      %c0_81 = arith.constant 0 : index
      %297 = vector.load %arg7[%c0_79, %c0_80, %c0_81] : memref<1x2x128xf32, #tpu.memory_space<vmem>>, vector<1x2x128xf32>
      %298 = vector.shape_cast %297 : vector<1x2x128xf32> to vector<2x128xf32>
      %c0_82 = arith.constant 0 : index
      %c0_83 = arith.constant 0 : index
      %299 = vector.load %arg10[%c0_82, %c0_83] : memref<2x128xf32, #tpu.memory_space<vmem>>, vector<2x128xf32>
      tpu.vector_store %arg10[%c0_82, %c0_83], %298 {strides = array<i32>} : memref<2x128xf32, #tpu.memory_space<vmem>>, vector<2x128xf32>,
    } else {
    }
    %c0 = arith.constant 0 : index
    %c0_1 = arith.constant 0 : index
    %c0_2 = arith.constant 0 : index
    %c0_3 = arith.constant 0 : index
    %3 = vector.load %arg2[%c0, %c0_1, %c0_2, %c0_3] : memref<1x8x2x48xbf16, #tpu.memory_space<vmem>>, vector<1x8x2x48xbf16>
    %4 = vector.shape_cast %3 : vector<1x8x2x48xbf16> to vector<8x2x48xbf16>
    %5 = vector.shape_cast %4 : vector<8x2x48xbf16> to vector<16x48xbf16>
    %c0_4 = arith.constant 0 : index
    %c0_5 = arith.constant 0 : index
    %c0_6 = arith.constant 0 : index
    %6 = vector.load %arg3[%c0_4, %c0_5, %c0_6] : memref<1x48x384xbf16, #tpu.memory_space<vmem>>, vector<1x48x384xbf16>
    %7 = vector.shape_cast %6 : vector<1x48x384xbf16> to vector<48x384xbf16>
    %cst = arith.constant dense<0.000000e+00> : vector<16x384xf32>
    %8 = tpu.matmul %5, %7, %cst {dimension_numbers = #tpu.dot_dimension_numbers<[1], [0], [0], [1], [0, 0, 1, 1], [], []>} : vector<16x48xbf16>, vector<48x384xbf16>, vector<16x384xf32> -> vector<16x384xf32>
    %c0_7 = arith.constant 0 : index
    %c0_8 = arith.constant 0 : index
    %c0_9 = arith.constant 0 : index
    %9 = vector.load %arg5[%c0_7, %c0_8, %c0_9] : memref<1x1x384xf32, #tpu.memory_space<vmem>>, vector<1x1x384xf32>
    %10 = vector.shape_cast %9 : vector<1x1x384xf32> to vector<1x384xf32>
    %11 = vector.broadcast %10 : vector<1x384xf32> to vector<16x384xf32>
    %12 = arith.addf %8, %11 : vector<16x384xf32>
    %13 = vector.shape_cast %12 : vector<16x384xf32> to vector<8x2x384xf32>
    %c0_10 = arith.constant 0 : index
    %c0_11 = arith.constant 0 : index
    %c0_12 = arith.constant 0 : index
    %14 = vector.load %arg4[%c0_10, %c0_11, %c0_12] : memref<1x128x384xbf16, #tpu.memory_space<vmem>>, vector<1x128x384xbf16>
    %15 = vector.shape_cast %14 : vector<1x128x384xbf16> to vector<128x384xbf16>
    %c0_13 = arith.constant 0 : index
    %c0_14 = arith.constant 0 : index
    %c0_15 = arith.constant 0 : index
    %16 = vector.load %arg6[%c0_13, %c0_14, %c0_15] : memref<1x1x384xf32, #tpu.memory_space<vmem>>, vector<1x1x384xf32>
    %17 = vector.shape_cast %16 : vector<1x1x384xf32> to vector<1x384xf32>
    %18 = vector.shape_cast %17 : vector<1x384xf32> to vector<1x384xf32>
    %19 = vector.broadcast %18 : vector<1x384xf32> to vector<2x384xf32>
    %c0_16 = arith.constant 0 : index
    %c0_17 = arith.constant 0 : index
    %20 = vector.load %arg10[%c0_16, %c0_17] : memref<2x128xf32, #tpu.memory_space<vmem>>, vector<2x128xf32>
    %21 = arith.truncf %20 : vector<2x128xf32> to vector<2x128xbf16>
    %cst_18 = arith.constant dense<0.000000e+00> : vector<2x384xf32>
    %22 = tpu.matmul %21, %15, %cst_18 {dimension_numbers = #tpu.dot_dimension_numbers<[1], [0], [0], [1], [0, 0, 1, 1], [], []>} : vector<2x128xbf16>, vector<128x384xbf16>, vector<2x384xf32> -> vector<2x384xf32>
    %23 = arith.addf %22, %19 : vector<2x384xf32>
    %24 = vector.extract_strided_slice %13 {offsets = [0, 0, 0], sizes = [1, 2, 384], strides = [1, 1, 1]} : vector<8x2x384xf32> to vector<1x2x384xf32>
    %25 = vector.shape_cast %24 : vector<1x2x384xf32> to vector<2x384xf32>
    %26 = vector.extract_strided_slice %25 {offsets = [0, 0], sizes = [2, 128], strides = [1, 1]} : vector<2x384xf32> to vector<2x128xf32>
    %27 = vector.extract_strided_slice %23 {offsets = [0, 0], sizes = [2, 128], strides = [1, 1]} : vector<2x384xf32> to vector<2x128xf32>
    %28 = arith.addf %26, %27 : vector<2x128xf32>
    %29 = arith.negf %28 : vector<2x128xf32>
    %30 = math.exp %29 : vector<2x128xf32>
    %cst_19 = arith.constant 1.000000e+00 : f32
    %31 = vector.broadcast %cst_19 : f32 to vector<2x128xf32>
    %32 = arith.addf %31, %30 : vector<2x128xf32>
    %33 = arith.divf %31, %32 : vector<2x128xf32>
    %34 = vector.extract_strided_slice %25 {offsets = [0, 128], sizes = [2, 128], strides = [1, 1]} : vector<2x384xf32> to vector<2x128xf32>
    %35 = vector.extract_strided_slice %23 {offsets = [0, 128], sizes = [2, 128], strides = [1, 1]} : vector<2x384xf32> to vector<2x128xf32>
    %36 = arith.addf %34, %35 : vector<2x128xf32>
    %37 = arith.negf %36 : vector<2x128xf32>
    %38 = math.exp %37 : vector<2x128xf32>
    %cst_20 = arith.constant 1.000000e+00 : f32
    %39 = vector.broadcast %cst_20 : f32 to vector<2x128xf32>
    %40 = arith.addf %39, %38 : vector<2x128xf32>
    %41 = arith.divf %39, %40 : vector<2x128xf32>
    %42 = vector.extract_strided_slice %25 {offsets = [0, 256], sizes = [2, 128], strides = [1, 1]} : vector<2x384xf32> to vector<2x128xf32>
    %43 = vector.extract_strided_slice %23 {offsets = [0, 256], sizes = [2, 128], strides = [1, 1]} : vector<2x384xf32> to vector<2x128xf32>
    %44 = arith.mulf %33, %43 : vector<2x128xf32>
    %45 = arith.addf %42, %44 : vector<2x128xf32>
    %46 = math.tanh %45 : vector<2x128xf32>
    %cst_21 = arith.constant 1.000000e+00 : f32
    %47 = vector.broadcast %cst_21 : f32 to vector<2x128xf32>
    %48 = arith.subf %47, %41 : vector<2x128xf32>
    %49 = arith.mulf %48, %46 : vector<2x128xf32>
    %50 = arith.mulf %41, %20 : vector<2x128xf32>
    %51 = arith.addf %49, %50 : vector<2x128xf32>
    %c0_22 = arith.constant 0 : index
    %c0_23 = arith.constant 0 : index
    %c0_24 = arith.constant 0 : index
    %c0_25 = arith.constant 0 : index
    %52 = vector.load %arg8[%c0_22, %c0_23, %c0_24, %c0_25] : memref<1x8x2x128xf32, #tpu.memory_space<vmem>>, vector<1x1x2x128xf32>
    %53 = vector.shape_cast %52 : vector<1x1x2x128xf32> to vector<2x128xf32>
    %54 = vector.shape_cast %51 : vector<2x128xf32> to vector<1x1x2x128xf32>
    tpu.vector_store %arg8[%c0_22, %c0_23, %c0_24, %c0_25], %54 {strides = array<i32>} : memref<1x8x2x128xf32, #tpu.memory_space<vmem>>, vector<1x1x2x128xf32>,
    %55 = arith.truncf %51 : vector<2x128xf32> to vector<2x128xbf16>
    %cst_26 = arith.constant dense<0.000000e+00> : vector<2x384xf32>
    %56 = tpu.matmul %55, %15, %cst_26 {dimension_numbers = #tpu.dot_dimension_numbers<[1], [0], [0], [1], [0, 0, 1, 1], [], []>} : vector<2x128xbf16>, vector<128x384xbf16>, vector<2x384xf32> -> vector<2x384xf32>
    %57 = arith.addf %56, %19 : vector<2x384xf32>
    %58 = vector.extract_strided_slice %13 {offsets = [1, 0, 0], sizes = [1, 2, 384], strides = [1, 1, 1]} : vector<8x2x384xf32> to vector<1x2x384xf32>
    %59 = vector.shape_cast %58 : vector<1x2x384xf32> to vector<2x384xf32>
    %60 = vector.extract_strided_slice %59 {offsets = [0, 0], sizes = [2, 128], strides = [1, 1]} : vector<2x384xf32> to vector<2x128xf32>
    %61 = vector.extract_strided_slice %57 {offsets = [0, 0], sizes = [2, 128], strides = [1, 1]} : vector<2x384xf32> to vector<2x128xf32>
    %62 = arith.addf %60, %61 : vector<2x128xf32>
    %63 = arith.negf %62 : vector<2x128xf32>
    %64 = math.exp %63 : vector<2x128xf32>
    %cst_27 = arith.constant 1.000000e+00 : f32
    %65 = vector.broadcast %cst_27 : f32 to vector<2x128xf32>
    %66 = arith.addf %65, %64 : vector<2x128xf32>
    %67 = arith.divf %65, %66 : vector<2x128xf32>
    %68 = vector.extract_strided_slice %59 {offsets = [0, 128], sizes = [2, 128], strides = [1, 1]} : vector<2x384xf32> to vector<2x128xf32>
    %69 = vector.extract_strided_slice %57 {offsets = [0, 128], sizes = [2, 128], strides = [1, 1]} : vector<2x384xf32> to vector<2x128xf32>
    %70 = arith.addf %68, %69 : vector<2x128xf32>
    %71 = arith.negf %70 : vector<2x128xf32>
    %72 = math.exp %71 : vector<2x128xf32>
    %cst_28 = arith.constant 1.000000e+00 : f32
    %73 = vector.broadcast %cst_28 : f32 to vector<2x128xf32>
    %74 = arith.addf %73, %72 : vector<2x128xf32>
    %75 = arith.divf %73, %74 : vector<2x128xf32>
    %76 = vector.extract_strided_slice %59 {offsets = [0, 256], sizes = [2, 128], strides = [1, 1]} : vector<2x384xf32> to vector<2x128xf32>
    %77 = vector.extract_strided_slice %57 {offsets = [0, 256], sizes = [2, 128], strides = [1, 1]} : vector<2x384xf32> to vector<2x128xf32>
    %78 = arith.mulf %67, %77 : vector<2x128xf32>
    %79 = arith.addf %76, %78 : vector<2x128xf32>
    %80 = math.tanh %79 : vector<2x128xf32>
    %cst_29 = arith.constant 1.000000e+00 : f32
    %81 = vector.broadcast %cst_29 : f32 to vector<2x128xf32>
    %82 = arith.subf %81, %75 : vector<2x128xf32>
    %83 = arith.mulf %82, %80 : vector<2x128xf32>
    %84 = arith.mulf %75, %51 : vector<2x128xf32>
    %85 = arith.addf %83, %84 : vector<2x128xf32>
    %c0_30 = arith.constant 0 : index
    %c1 = arith.constant 1 : index
    %c0_31 = arith.constant 0 : index
    %c0_32 = arith.constant 0 : index
    %86 = vector.load %arg8[%c0_30, %c1, %c0_31, %c0_32] : memref<1x8x2x128xf32, #tpu.memory_space<vmem>>, vector<1x1x2x128xf32>
    %87 = vector.shape_cast %86 : vector<1x1x2x128xf32> to vector<2x128xf32>
    %88 = vector.shape_cast %85 : vector<2x128xf32> to vector<1x1x2x128xf32>
    tpu.vector_store %arg8[%c0_30, %c1, %c0_31, %c0_32], %88 {strides = array<i32>} : memref<1x8x2x128xf32, #tpu.memory_space<vmem>>, vector<1x1x2x128xf32>,
    %89 = arith.truncf %85 : vector<2x128xf32> to vector<2x128xbf16>
    %cst_33 = arith.constant dense<0.000000e+00> : vector<2x384xf32>
    %90 = tpu.matmul %89, %15, %cst_33 {dimension_numbers = #tpu.dot_dimension_numbers<[1], [0], [0], [1], [0, 0, 1, 1], [], []>} : vector<2x128xbf16>, vector<128x384xbf16>, vector<2x384xf32> -> vector<2x384xf32>
    %91 = arith.addf %90, %19 : vector<2x384xf32>
    %92 = vector.extract_strided_slice %13 {offsets = [2, 0, 0], sizes = [1, 2, 384], strides = [1, 1, 1]} : vector<8x2x384xf32> to vector<1x2x384xf32>
    %93 = vector.shape_cast %92 : vector<1x2x384xf32> to vector<2x384xf32>
    %94 = vector.extract_strided_slice %93 {offsets = [0, 0], sizes = [2, 128], strides = [1, 1]} : vector<2x384xf32> to vector<2x128xf32>
    %95 = vector.extract_strided_slice %91 {offsets = [0, 0], sizes = [2, 128], strides = [1, 1]} : vector<2x384xf32> to vector<2x128xf32>
    %96 = arith.addf %94, %95 : vector<2x128xf32>
    %97 = arith.negf %96 : vector<2x128xf32>
    %98 = math.exp %97 : vector<2x128xf32>
    %cst_34 = arith.constant 1.000000e+00 : f32
    %99 = vector.broadcast %cst_34 : f32 to vector<2x128xf32>
    %100 = arith.addf %99, %98 : vector<2x128xf32>
    %101 = arith.divf %99, %100 : vector<2x128xf32>
    %102 = vector.extract_strided_slice %93 {offsets = [0, 128], sizes = [2, 128], strides = [1, 1]} : vector<2x384xf32> to vector<2x128xf32>
    %103 = vector.extract_strided_slice %91 {offsets = [0, 128], sizes = [2, 128], strides = [1, 1]} : vector<2x384xf32> to vector<2x128xf32>
    %104 = arith.addf %102, %103 : vector<2x128xf32>
    %105 = arith.negf %104 : vector<2x128xf32>
    %106 = math.exp %105 : vector<2x128xf32>
    %cst_35 = arith.constant 1.000000e+00 : f32
    %107 = vector.broadcast %cst_35 : f32 to vector<2x128xf32>
    %108 = arith.addf %107, %106 : vector<2x128xf32>
    %109 = arith.divf %107, %108 : vector<2x128xf32>
    %110 = vector.extract_strided_slice %93 {offsets = [0, 256], sizes = [2, 128], strides = [1, 1]} : vector<2x384xf32> to vector<2x128xf32>
    %111 = vector.extract_strided_slice %91 {offsets = [0, 256], sizes = [2, 128], strides = [1, 1]} : vector<2x384xf32> to vector<2x128xf32>
    %112 = arith.mulf %101, %111 : vector<2x128xf32>
    %113 = arith.addf %110, %112 : vector<2x128xf32>
    %114 = math.tanh %113 : vector<2x128xf32>
    %cst_36 = arith.constant 1.000000e+00 : f32
    %115 = vector.broadcast %cst_36 : f32 to vector<2x128xf32>
    %116 = arith.subf %115, %109 : vector<2x128xf32>
    %117 = arith.mulf %116, %114 : vector<2x128xf32>
    %118 = arith.mulf %109, %85 : vector<2x128xf32>
    %119 = arith.addf %117, %118 : vector<2x128xf32>
    %c0_37 = arith.constant 0 : index
    %c2 = arith.constant 2 : index
    %c0_38 = arith.constant 0 : index
    %c0_39 = arith.constant 0 : index
    %120 = vector.load %arg8[%c0_37, %c2, %c0_38, %c0_39] : memref<1x8x2x128xf32, #tpu.memory_space<vmem>>, vector<1x1x2x128xf32>
    %121 = vector.shape_cast %120 : vector<1x1x2x128xf32> to vector<2x128xf32>
    %122 = vector.shape_cast %119 : vector<2x128xf32> to vector<1x1x2x128xf32>
    tpu.vector_store %arg8[%c0_37, %c2, %c0_38, %c0_39], %122 {strides = array<i32>} : memref<1x8x2x128xf32, #tpu.memory_space<vmem>>, vector<1x1x2x128xf32>,
    %123 = arith.truncf %119 : vector<2x128xf32> to vector<2x128xbf16>
    %cst_40 = arith.constant dense<0.000000e+00> : vector<2x384xf32>
    %124 = tpu.matmul %123, %15, %cst_40 {dimension_numbers = #tpu.dot_dimension_numbers<[1], [0], [0], [1], [0, 0, 1, 1], [], []>} : vector<2x128xbf16>, vector<128x384xbf16>, vector<2x384xf32> -> vector<2x384xf32>
    %125 = arith.addf %124, %19 : vector<2x384xf32>
    %126 = vector.extract_strided_slice %13 {offsets = [3, 0, 0], sizes = [1, 2, 384], strides = [1, 1, 1]} : vector<8x2x384xf32> to vector<1x2x384xf32>
    %127 = vector.shape_cast %126 : vector<1x2x384xf32> to vector<2x384xf32>
    %128 = vector.extract_strided_slice %127 {offsets = [0, 0], sizes = [2, 128], strides = [1, 1]} : vector<2x384xf32> to vector<2x128xf32>
    %129 = vector.extract_strided_slice %125 {offsets = [0, 0], sizes = [2, 128], strides = [1, 1]} : vector<2x384xf32> to vector<2x128xf32>
    %130 = arith.addf %128, %129 : vector<2x128xf32>
    %131 = arith.negf %130 : vector<2x128xf32>
    %132 = math.exp %131 : vector<2x128xf32>
    %cst_41 = arith.constant 1.000000e+00 : f32
    %133 = vector.broadcast %cst_41 : f32 to vector<2x128xf32>
    %134 = arith.addf %133, %132 : vector<2x128xf32>
    %135 = arith.divf %133, %134 : vector<2x128xf32>
    %136 = vector.extract_strided_slice %127 {offsets = [0, 128], sizes = [2, 128], strides = [1, 1]} : vector<2x384xf32> to vector<2x128xf32>
    %137 = vector.extract_strided_slice %125 {offsets = [0, 128], sizes = [2, 128], strides = [1, 1]} : vector<2x384xf32> to vector<2x128xf32>
    %138 = arith.addf %136, %137 : vector<2x128xf32>
    %139 = arith.negf %138 : vector<2x128xf32>
    %140 = math.exp %139 : vector<2x128xf32>
    %cst_42 = arith.constant 1.000000e+00 : f32
    %141 = vector.broadcast %cst_42 : f32 to vector<2x128xf32>
    %142 = arith.addf %141, %140 : vector<2x128xf32>
    %143 = arith.divf %141, %142 : vector<2x128xf32>
    %144 = vector.extract_strided_slice %127 {offsets = [0, 256], sizes = [2, 128], strides = [1, 1]} : vector<2x384xf32> to vector<2x128xf32>
    %145 = vector.extract_strided_slice %125 {offsets = [0, 256], sizes = [2, 128], strides = [1, 1]} : vector<2x384xf32> to vector<2x128xf32>
    %146 = arith.mulf %135, %145 : vector<2x128xf32>
    %147 = arith.addf %144, %146 : vector<2x128xf32>
    %148 = math.tanh %147 : vector<2x128xf32>
    %cst_43 = arith.constant 1.000000e+00 : f32
    %149 = vector.broadcast %cst_43 : f32 to vector<2x128xf32>
    %150 = arith.subf %149, %143 : vector<2x128xf32>
    %151 = arith.mulf %150, %148 : vector<2x128xf32>
    %152 = arith.mulf %143, %119 : vector<2x128xf32>
    %153 = arith.addf %151, %152 : vector<2x128xf32>
    %c0_44 = arith.constant 0 : index
    %c3 = arith.constant 3 : index
    %c0_45 = arith.constant 0 : index
    %c0_46 = arith.constant 0 : index
    %154 = vector.load %arg8[%c0_44, %c3, %c0_45, %c0_46] : memref<1x8x2x128xf32, #tpu.memory_space<vmem>>, vector<1x1x2x128xf32>
    %155 = vector.shape_cast %154 : vector<1x1x2x128xf32> to vector<2x128xf32>
    %156 = vector.shape_cast %153 : vector<2x128xf32> to vector<1x1x2x128xf32>
    tpu.vector_store %arg8[%c0_44, %c3, %c0_45, %c0_46], %156 {strides = array<i32>} : memref<1x8x2x128xf32, #tpu.memory_space<vmem>>, vector<1x1x2x128xf32>,
    %157 = arith.truncf %153 : vector<2x128xf32> to vector<2x128xbf16>
    %cst_47 = arith.constant dense<0.000000e+00> : vector<2x384xf32>
    %158 = tpu.matmul %157, %15, %cst_47 {dimension_numbers = #tpu.dot_dimension_numbers<[1], [0], [0], [1], [0, 0, 1, 1], [], []>} : vector<2x128xbf16>, vector<128x384xbf16>, vector<2x384xf32> -> vector<2x384xf32>
    %159 = arith.addf %158, %19 : vector<2x384xf32>
    %160 = vector.extract_strided_slice %13 {offsets = [4, 0, 0], sizes = [1, 2, 384], strides = [1, 1, 1]} : vector<8x2x384xf32> to vector<1x2x384xf32>
    %161 = vector.shape_cast %160 : vector<1x2x384xf32> to vector<2x384xf32>
    %162 = vector.extract_strided_slice %161 {offsets = [0, 0], sizes = [2, 128], strides = [1, 1]} : vector<2x384xf32> to vector<2x128xf32>
    %163 = vector.extract_strided_slice %159 {offsets = [0, 0], sizes = [2, 128], strides = [1, 1]} : vector<2x384xf32> to vector<2x128xf32>
    %164 = arith.addf %162, %163 : vector<2x128xf32>
    %165 = arith.negf %164 : vector<2x128xf32>
    %166 = math.exp %165 : vector<2x128xf32>
    %cst_48 = arith.constant 1.000000e+00 : f32
    %167 = vector.broadcast %cst_48 : f32 to vector<2x128xf32>
    %168 = arith.addf %167, %166 : vector<2x128xf32>
    %169 = arith.divf %167, %168 : vector<2x128xf32>
    %170 = vector.extract_strided_slice %161 {offsets = [0, 128], sizes = [2, 128], strides = [1, 1]} : vector<2x384xf32> to vector<2x128xf32>
    %171 = vector.extract_strided_slice %159 {offsets = [0, 128], sizes = [2, 128], strides = [1, 1]} : vector<2x384xf32> to vector<2x128xf32>
    %172 = arith.addf %170, %171 : vector<2x128xf32>
    %173 = arith.negf %172 : vector<2x128xf32>
    %174 = math.exp %173 : vector<2x128xf32>
    %cst_49 = arith.constant 1.000000e+00 : f32
    %175 = vector.broadcast %cst_49 : f32 to vector<2x128xf32>
    %176 = arith.addf %175, %174 : vector<2x128xf32>
    %177 = arith.divf %175, %176 : vector<2x128xf32>
    %178 = vector.extract_strided_slice %161 {offsets = [0, 256], sizes = [2, 128], strides = [1, 1]} : vector<2x384xf32> to vector<2x128xf32>
    %179 = vector.extract_strided_slice %159 {offsets = [0, 256], sizes = [2, 128], strides = [1, 1]} : vector<2x384xf32> to vector<2x128xf32>
    %180 = arith.mulf %169, %179 : vector<2x128xf32>
    %181 = arith.addf %178, %180 : vector<2x128xf32>
    %182 = math.tanh %181 : vector<2x128xf32>
    %cst_50 = arith.constant 1.000000e+00 : f32
    %183 = vector.broadcast %cst_50 : f32 to vector<2x128xf32>
    %184 = arith.subf %183, %177 : vector<2x128xf32>
    %185 = arith.mulf %184, %182 : vector<2x128xf32>
    %186 = arith.mulf %177, %153 : vector<2x128xf32>
    %187 = arith.addf %185, %186 : vector<2x128xf32>
    %c0_51 = arith.constant 0 : index
    %c4 = arith.constant 4 : index
    %c0_52 = arith.constant 0 : index
    %c0_53 = arith.constant 0 : index
    %188 = vector.load %arg8[%c0_51, %c4, %c0_52, %c0_53] : memref<1x8x2x128xf32, #tpu.memory_space<vmem>>, vector<1x1x2x128xf32>
    %189 = vector.shape_cast %188 : vector<1x1x2x128xf32> to vector<2x128xf32>
    %190 = vector.shape_cast %187 : vector<2x128xf32> to vector<1x1x2x128xf32>
    tpu.vector_store %arg8[%c0_51, %c4, %c0_52, %c0_53], %190 {strides = array<i32>} : memref<1x8x2x128xf32, #tpu.memory_space<vmem>>, vector<1x1x2x128xf32>,
    %191 = arith.truncf %187 : vector<2x128xf32> to vector<2x128xbf16>
    %cst_54 = arith.constant dense<0.000000e+00> : vector<2x384xf32>
    %192 = tpu.matmul %191, %15, %cst_54 {dimension_numbers = #tpu.dot_dimension_numbers<[1], [0], [0], [1], [0, 0, 1, 1], [], []>} : vector<2x128xbf16>, vector<128x384xbf16>, vector<2x384xf32> -> vector<2x384xf32>
    %193 = arith.addf %192, %19 : vector<2x384xf32>
    %194 = vector.extract_strided_slice %13 {offsets = [5, 0, 0], sizes = [1, 2, 384], strides = [1, 1, 1]} : vector<8x2x384xf32> to vector<1x2x384xf32>
    %195 = vector.shape_cast %194 : vector<1x2x384xf32> to vector<2x384xf32>
    %196 = vector.extract_strided_slice %195 {offsets = [0, 0], sizes = [2, 128], strides = [1, 1]} : vector<2x384xf32> to vector<2x128xf32>
    %197 = vector.extract_strided_slice %193 {offsets = [0, 0], sizes = [2, 128], strides = [1, 1]} : vector<2x384xf32> to vector<2x128xf32>
    %198 = arith.addf %196, %197 : vector<2x128xf32>
    %199 = arith.negf %198 : vector<2x128xf32>
    %200 = math.exp %199 : vector<2x128xf32>
    %cst_55 = arith.constant 1.000000e+00 : f32
    %201 = vector.broadcast %cst_55 : f32 to vector<2x128xf32>
    %202 = arith.addf %201, %200 : vector<2x128xf32>
    %203 = arith.divf %201, %202 : vector<2x128xf32>
    %204 = vector.extract_strided_slice %195 {offsets = [0, 128], sizes = [2, 128], strides = [1, 1]} : vector<2x384xf32> to vector<2x128xf32>
    %205 = vector.extract_strided_slice %193 {offsets = [0, 128], sizes = [2, 128], strides = [1, 1]} : vector<2x384xf32> to vector<2x128xf32>
    %206 = arith.addf %204, %205 : vector<2x128xf32>
    %207 = arith.negf %206 : vector<2x128xf32>
    %208 = math.exp %207 : vector<2x128xf32>
    %cst_56 = arith.constant 1.000000e+00 : f32
    %209 = vector.broadcast %cst_56 : f32 to vector<2x128xf32>
    %210 = arith.addf %209, %208 : vector<2x128xf32>
    %211 = arith.divf %209, %210 : vector<2x128xf32>
    %212 = vector.extract_strided_slice %195 {offsets = [0, 256], sizes = [2, 128], strides = [1, 1]} : vector<2x384xf32> to vector<2x128xf32>
    %213 = vector.extract_strided_slice %193 {offsets = [0, 256], sizes = [2, 128], strides = [1, 1]} : vector<2x384xf32> to vector<2x128xf32>
    %214 = arith.mulf %203, %213 : vector<2x128xf32>
    %215 = arith.addf %212, %214 : vector<2x128xf32>
    %216 = math.tanh %215 : vector<2x128xf32>
    %cst_57 = arith.constant 1.000000e+00 : f32
    %217 = vector.broadcast %cst_57 : f32 to vector<2x128xf32>
    %218 = arith.subf %217, %211 : vector<2x128xf32>
    %219 = arith.mulf %218, %216 : vector<2x128xf32>
    %220 = arith.mulf %211, %187 : vector<2x128xf32>
    %221 = arith.addf %219, %220 : vector<2x128xf32>
    %c0_58 = arith.constant 0 : index
    %c5 = arith.constant 5 : index
    %c0_59 = arith.constant 0 : index
    %c0_60 = arith.constant 0 : index
    %222 = vector.load %arg8[%c0_58, %c5, %c0_59, %c0_60] : memref<1x8x2x128xf32, #tpu.memory_space<vmem>>, vector<1x1x2x128xf32>
    %223 = vector.shape_cast %222 : vector<1x1x2x128xf32> to vector<2x128xf32>
    %224 = vector.shape_cast %221 : vector<2x128xf32> to vector<1x1x2x128xf32>
    tpu.vector_store %arg8[%c0_58, %c5, %c0_59, %c0_60], %224 {strides = array<i32>} : memref<1x8x2x128xf32, #tpu.memory_space<vmem>>, vector<1x1x2x128xf32>,
    %225 = arith.truncf %221 : vector<2x128xf32> to vector<2x128xbf16>
    %cst_61 = arith.constant dense<0.000000e+00> : vector<2x384xf32>
    %226 = tpu.matmul %225, %15, %cst_61 {dimension_numbers = #tpu.dot_dimension_numbers<[1], [0], [0], [1], [0, 0, 1, 1], [], []>} : vector<2x128xbf16>, vector<128x384xbf16>, vector<2x384xf32> -> vector<2x384xf32>
    %227 = arith.addf %226, %19 : vector<2x384xf32>
    %228 = vector.extract_strided_slice %13 {offsets = [6, 0, 0], sizes = [1, 2, 384], strides = [1, 1, 1]} : vector<8x2x384xf32> to vector<1x2x384xf32>
    %229 = vector.shape_cast %228 : vector<1x2x384xf32> to vector<2x384xf32>
    %230 = vector.extract_strided_slice %229 {offsets = [0, 0], sizes = [2, 128], strides = [1, 1]} : vector<2x384xf32> to vector<2x128xf32>
    %231 = vector.extract_strided_slice %227 {offsets = [0, 0], sizes = [2, 128], strides = [1, 1]} : vector<2x384xf32> to vector<2x128xf32>
    %232 = arith.addf %230, %231 : vector<2x128xf32>
    %233 = arith.negf %232 : vector<2x128xf32>
    %234 = math.exp %233 : vector<2x128xf32>
    %cst_62 = arith.constant 1.000000e+00 : f32
    %235 = vector.broadcast %cst_62 : f32 to vector<2x128xf32>
    %236 = arith.addf %235, %234 : vector<2x128xf32>
    %237 = arith.divf %235, %236 : vector<2x128xf32>
    %238 = vector.extract_strided_slice %229 {offsets = [0, 128], sizes = [2, 128], strides = [1, 1]} : vector<2x384xf32> to vector<2x128xf32>
    %239 = vector.extract_strided_slice %227 {offsets = [0, 128], sizes = [2, 128], strides = [1, 1]} : vector<2x384xf32> to vector<2x128xf32>
    %240 = arith.addf %238, %239 : vector<2x128xf32>
    %241 = arith.negf %240 : vector<2x128xf32>
    %242 = math.exp %241 : vector<2x128xf32>
    %cst_63 = arith.constant 1.000000e+00 : f32
    %243 = vector.broadcast %cst_63 : f32 to vector<2x128xf32>
    %244 = arith.addf %243, %242 : vector<2x128xf32>
    %245 = arith.divf %243, %244 : vector<2x128xf32>
    %246 = vector.extract_strided_slice %229 {offsets = [0, 256], sizes = [2, 128], strides = [1, 1]} : vector<2x384xf32> to vector<2x128xf32>
    %247 = vector.extract_strided_slice %227 {offsets = [0, 256], sizes = [2, 128], strides = [1, 1]} : vector<2x384xf32> to vector<2x128xf32>
    %248 = arith.mulf %237, %247 : vector<2x128xf32>
    %249 = arith.addf %246, %248 : vector<2x128xf32>
    %250 = math.tanh %249 : vector<2x128xf32>
    %cst_64 = arith.constant 1.000000e+00 : f32
    %251 = vector.broadcast %cst_64 : f32 to vector<2x128xf32>
    %252 = arith.subf %251, %245 : vector<2x128xf32>
    %253 = arith.mulf %252, %250 : vector<2x128xf32>
    %254 = arith.mulf %245, %221 : vector<2x128xf32>
    %255 = arith.addf %253, %254 : vector<2x128xf32>
    %c0_65 = arith.constant 0 : index
    %c6 = arith.constant 6 : index
    %c0_66 = arith.constant 0 : index
    %c0_67 = arith.constant 0 : index
    %256 = vector.load %arg8[%c0_65, %c6, %c0_66, %c0_67] : memref<1x8x2x128xf32, #tpu.memory_space<vmem>>, vector<1x1x2x128xf32>
    %257 = vector.shape_cast %256 : vector<1x1x2x128xf32> to vector<2x128xf32>
    %258 = vector.shape_cast %255 : vector<2x128xf32> to vector<1x1x2x128xf32>
    tpu.vector_store %arg8[%c0_65, %c6, %c0_66, %c0_67], %258 {strides = array<i32>} : memref<1x8x2x128xf32, #tpu.memory_space<vmem>>, vector<1x1x2x128xf32>,
    %259 = arith.truncf %255 : vector<2x128xf32> to vector<2x128xbf16>
    %cst_68 = arith.constant dense<0.000000e+00> : vector<2x384xf32>
    %260 = tpu.matmul %259, %15, %cst_68 {dimension_numbers = #tpu.dot_dimension_numbers<[1], [0], [0], [1], [0, 0, 1, 1], [], []>} : vector<2x128xbf16>, vector<128x384xbf16>, vector<2x384xf32> -> vector<2x384xf32>
    %261 = arith.addf %260, %19 : vector<2x384xf32>
    %262 = vector.extract_strided_slice %13 {offsets = [7, 0, 0], sizes = [1, 2, 384], strides = [1, 1, 1]} : vector<8x2x384xf32> to vector<1x2x384xf32>
    %263 = vector.shape_cast %262 : vector<1x2x384xf32> to vector<2x384xf32>
    %264 = vector.extract_strided_slice %263 {offsets = [0, 0], sizes = [2, 128], strides = [1, 1]} : vector<2x384xf32> to vector<2x128xf32>
    %265 = vector.extract_strided_slice %261 {offsets = [0, 0], sizes = [2, 128], strides = [1, 1]} : vector<2x384xf32> to vector<2x128xf32>
    %266 = arith.addf %264, %265 : vector<2x128xf32>
    %267 = arith.negf %266 : vector<2x128xf32>
    %268 = math.exp %267 : vector<2x128xf32>
    %cst_69 = arith.constant 1.000000e+00 : f32
    %269 = vector.broadcast %cst_69 : f32 to vector<2x128xf32>
    %270 = arith.addf %269, %268 : vector<2x128xf32>
    %271 = arith.divf %269, %270 : vector<2x128xf32>
    %272 = vector.extract_strided_slice %263 {offsets = [0, 128], sizes = [2, 128], strides = [1, 1]} : vector<2x384xf32> to vector<2x128xf32>
    %273 = vector.extract_strided_slice %261 {offsets = [0, 128], sizes = [2, 128], strides = [1, 1]} : vector<2x384xf32> to vector<2x128xf32>
    %274 = arith.addf %272, %273 : vector<2x128xf32>
    %275 = arith.negf %274 : vector<2x128xf32>
    %276 = math.exp %275 : vector<2x128xf32>
    %cst_70 = arith.constant 1.000000e+00 : f32
    %277 = vector.broadcast %cst_70 : f32 to vector<2x128xf32>
    %278 = arith.addf %277, %276 : vector<2x128xf32>
    %279 = arith.divf %277, %278 : vector<2x128xf32>
    %280 = vector.extract_strided_slice %263 {offsets = [0, 256], sizes = [2, 128], strides = [1, 1]} : vector<2x384xf32> to vector<2x128xf32>
    %281 = vector.extract_strided_slice %261 {offsets = [0, 256], sizes = [2, 128], strides = [1, 1]} : vector<2x384xf32> to vector<2x128xf32>
    %282 = arith.mulf %271, %281 : vector<2x128xf32>
    %283 = arith.addf %280, %282 : vector<2x128xf32>
    %284 = math.tanh %283 : vector<2x128xf32>
    %cst_71 = arith.constant 1.000000e+00 : f32
    %285 = vector.broadcast %cst_71 : f32 to vector<2x128xf32>
    %286 = arith.subf %285, %279 : vector<2x128xf32>
    %287 = arith.mulf %286, %284 : vector<2x128xf32>
    %288 = arith.mulf %279, %255 : vector<2x128xf32>
    %289 = arith.addf %287, %288 : vector<2x128xf32>
    %c0_72 = arith.constant 0 : index
    %c7 = arith.constant 7 : index
    %c0_73 = arith.constant 0 : index
    %c0_74 = arith.constant 0 : index
    %290 = vector.load %arg8[%c0_72, %c7, %c0_73, %c0_74] : memref<1x8x2x128xf32, #tpu.memory_space<vmem>>, vector<1x1x2x128xf32>
    %291 = vector.shape_cast %290 : vector<1x1x2x128xf32> to vector<2x128xf32>
    %292 = vector.shape_cast %289 : vector<2x128xf32> to vector<1x1x2x128xf32>
    tpu.vector_store %arg8[%c0_72, %c7, %c0_73, %c0_74], %292 {strides = array<i32>} : memref<1x8x2x128xf32, #tpu.memory_space<vmem>>, vector<1x1x2x128xf32>,
    %c0_75 = arith.constant 0 : index
    %c0_76 = arith.constant 0 : index
    %293 = vector.load %arg10[%c0_75, %c0_76] : memref<2x128xf32, #tpu.memory_space<vmem>>, vector<2x128xf32>
    tpu.vector_store %arg10[%c0_75, %c0_76], %289 {strides = array<i32>} : memref<2x128xf32, #tpu.memory_space<vmem>>, vector<2x128xf32>,
    %c0_i32_77 = arith.constant 0 : i32
    %294 = arith.cmpi eq, %arg1, %c0_i32_77 : i32
    %295 = arith.extui %294 : i1 to i32
    %c0_i32_78 = arith.constant 0 : i32
    %296 = arith.cmpi ne, %295, %c0_i32_78 : i32
    scf.if %296 {
      %c0_79 = arith.constant 0 : index
      %c0_80 = arith.constant 0 : index
      %c0_81 = arith.constant 0 : index
      %297 = vector.load %arg9[%c0_79, %c0_80, %c0_81] : memref<1x2x128xf32, #tpu.memory_space<vmem>>, vector<1x2x128xf32>
      %298 = vector.shape_cast %297 : vector<1x2x128xf32> to vector<2x128xf32>
      %299 = vector.shape_cast %289 : vector<2x128xf32> to vector<1x2x128xf32>
      tpu.vector_store %arg9[%c0_79, %c0_80, %c0_81], %299 {strides = array<i32>} : memref<1x2x128xf32, #tpu.memory_space<vmem>>, vector<1x2x128xf32>,
    } else {
    }
    return
  }
  func.func @transform_0(%arg0: i32, %arg1: i32) -> (i32, i32, i32, i32) {
    %c0_i32 = arith.constant 0 : i32
    %c0_i32_0 = arith.constant 0 : i32
    %c0_i32_1 = arith.constant 0 : i32
    return %arg0, %arg1, %c0_i32, %c0_i32_0 : i32, i32, i32, i32
  }
  func.func @transform_1(%arg0: i32, %arg1: i32) -> (i32, i32, i32) {
    %c0_i32 = arith.constant 0 : i32
    %c0_i32_0 = arith.constant 0 : i32
    %c0_i32_1 = arith.constant 0 : i32
    return %arg0, %c0_i32, %c0_i32_0 : i32, i32, i32
  }
  func.func @transform_2(%arg0: i32, %arg1: i32) -> (i32, i32, i32) {
    %c0_i32 = arith.constant 0 : i32
    %c0_i32_0 = arith.constant 0 : i32
    %c0_i32_1 = arith.constant 0 : i32
    return %arg0, %c0_i32, %c0_i32_0 : i32, i32, i32
  }
  func.func @transform_3(%arg0: i32, %arg1: i32) -> (i32, i32, i32) {
    %c0_i32 = arith.constant 0 : i32
    %c0_i32_0 = arith.constant 0 : i32
    %c0_i32_1 = arith.constant 0 : i32
    return %arg0, %c0_i32, %c0_i32_0 : i32, i32, i32
  }
  func.func @transform_4(%arg0: i32, %arg1: i32) -> (i32, i32, i32) {
    %c0_i32 = arith.constant 0 : i32
    %c0_i32_0 = arith.constant 0 : i32
    %c0_i32_1 = arith.constant 0 : i32
    return %arg0, %c0_i32, %c0_i32_0 : i32, i32, i32
  }
  func.func @transform_5(%arg0: i32, %arg1: i32) -> (i32, i32, i32) {
    %c0_i32 = arith.constant 0 : i32
    %c0_i32_0 = arith.constant 0 : i32
    %c0_i32_1 = arith.constant 0 : i32
    return %arg0, %c0_i32, %c0_i32_0 : i32, i32, i32
  }
  func.func @transform_6(%arg0: i32, %arg1: i32) -> (i32, i32, i32, i32) {
    %c0_i32 = arith.constant 0 : i32
    %c0_i32_0 = arith.constant 0 : i32
    %c0_i32_1 = arith.constant 0 : i32
    return %arg0, %arg1, %c0_i32, %c0_i32_0 : i32, i32, i32, i32
  }
  func.func @transform_7(%arg0: i32, %arg1: i32) -> (i32, i32, i32) {
    %c0_i32 = arith.constant 0 : i32
    %c0_i32_0 = arith.constant 0 : i32
    %c0_i32_1 = arith.constant 0 : i32
    return %arg0, %c0_i32, %c0_i32_0 : i32, i32, i32
  }
}

</mosaic_0001>

<bundles_post_ra>
// kernel: tpu_custom_call.1
= control target key start
LH: loop header
LB: loop body
LE: loop exit
PB: predicated region body
PF: predicated region fallthrough
CT: control target
= control target key end

     0   :  { %s3276_s0 = inlined_call_operand.hbm [shape: bf16[2,8,2,48], index: 0, kind: input, shape index: {}]   ;;  %s3277_s1 = inlined_call_operand.hbm [shape: bf16[2,48,384], index: 1, kind: input, shape index: {}]   ;;  %s3278_s2 = inlined_call_operand.hbm [shape: bf16[2,128,384], index: 2, kind: input, shape index: {}]   ;;  %s3279_s3 = inlined_call_operand.hbm [shape: f32[2,1,384], index: 3, kind: input, shape index: {}]   ;;  %s3280_s4 = inlined_call_operand.hbm [shape: f32[2,1,384], index: 4, kind: input, shape index: {}]   ;;  %s3281_s5 = inlined_call_operand.vmem [shape: f32[2,2,128], index: 5, kind: input, shape index: {}]   ;;  %s3282_s6 = inlined_call_operand.hbm [shape: f32[2,8,2,128], index: 6, kind: output, shape index: {0}]   ;;  %s3283_s7 = inlined_call_operand.hbm [shape: f32[2,2,128], index: 7, kind: output, shape index: {1}]  }
   0x1   :  { %3298 = sst [smem:[#allocation28_spill]] %s3276_s0 }
   0x2   :  { %3299 = sst [smem:[#allocation29_spill]] %s3277_s1 }
   0x3   :  { %3300 = sst [smem:[#allocation30_spill]] %s3279_s3 }
   0x4   :  { %3301 = sst [smem:[#allocation31_spill]] %s3281_s5 }
   0x5   :  { %3302 = sst [smem:[#allocation32_spill]] %s3282_s6 }
   0x6   :  { %3303 = sst [smem:[#allocation33_spill]] %s3283_s7 }
   0x7   :  { %13 = vsyncpa [#allocation4], 0 }
   0x8   :  { %15 = vsyncpa [#allocation4 + $0x1], 0 }
   0x9   :  { %16 = vsyncpa [#allocation7], 0 }
   0xa   :  { %18 = vsyncpa [#allocation7 + $0x1], 0 }
   0xb   :  { %19 = vsyncpa [#allocation10], 0 }
   0xc   :  { %21 = vsyncpa [#allocation10 + $0x1], 0 }
   0xd   :  { %22 = vsyncpa [#allocation5], 0 }
   0xe   :  { %24 = vsyncpa [#allocation5 + $0x1], 0 }
   0xf   :  { %25 = vsyncpa [#allocation14], 0 }
  0x10   :  { %27 = vsyncpa [#allocation14 + $0x1], 0  ;;  %s2587_s24 = smov 0   ;;  %s2589_s25 = smov 0  }
  0x11   :  { %s2591_s26 = smov 0   ;;  %s2593_s27 = smov 0  }
  0x12   :  { %s2595_s28 = smov 0   ;;  %s2597_s29 = smov 0  }
  0x13 LB: > { %3304 = sst [smem:[#allocation20_spill]] %s2519_s24  ;;  %s2618_s30 = sadd.s32 4294967295, %s2539_s29   ;;  %s2539_s29 = sphi %s2597_s29, %s33_s29   ;;  %s2535_s28 = sphi %s2595_s28, %s3338_s28   ;;  %s2531_s27 = sphi %s2593_s27, %s3337_s27   ;;  %s2527_s26 = sphi %s2591_s26, %s3333_s26   ;;  %s2523_s25 = sphi %s2589_s25, %s3336_s25   ;;  %s2519_s24 = sphi %s2587_s24, %s3335_s24  }
  0x14   : > { %3305 = sst [smem:[#allocation21_spill]] %s2527_s26  ;;  %s1872_s8 = sadd.s32 4294967294, %s2539_s29  }
  0x15   : > { %3306 = sst [smem:[#allocation22_spill]] %s2531_s27  ;;  %s45_s9 = sadd.s32 1, %s2535_s28 }
  0x16   : > { %3307 = sst [smem:[#allocation23_spill]] %s2539_s29  ;;  %s54_s10 = sadd.s32 1, %s2527_s26 }
  0x17   : > { %p47_p0 = scmp.ge.s32.totalorder %s45_s9, 2  ;;  %p61_p1 = scmp.ne.s32.totalorder %s2527_s26, %s2523_s25 }
  0x18   : > { %p62_p2 = scmp.eq.s32.totalorder %s2539_s29, 0  ;;  %p67_p3 = scmp.ne.s32.totalorder %s2523_s25, %s2519_s24 }
  0x19   : > { %s3340_s9 = smov (%p47_p0, %s45_s9), 0  ;;  %p68_p5 = scmp.eq.s32.totalorder %s2618_s30, 0 }
  0x1a   : > { %3308 = sst [smem:[#allocation24_spill]] %s3340_s9  ;;  %p2630_p4 = por %p62_p2, %p61_p1 }
  0x1b   : > { %s49_s12 = ssub.s32 %s2535_s28, %s3340_s9  ;;  %p223_p6 = scmp.eq.s32.totalorder %s2618_s30, 1 }
  0x1c   : > { %p52_p7 = scmp.eq.s32.totalorder %s49_s12, 0  ;;  %p2638_p8 = por %p68_p5, %p67_p3 }
  0x1d   : > { %p2642_p9 = por %p223_p6, %p61_p1  ;;  %p229_p10 = scmp.eq.s32.totalorder %s1872_s8, 1 }
  0x1e   : > { %s2647_s15 = scalar_select %p52_p7, %s2527_s26, %s54_s10  }
  0x1f   : > { %s3311_s14 = scalar_select %p2642_p9, 1, 0 }
  0x20   : > { %3313 = sst [smem:[#allocation26_spill]] %s2647_s15  ;;  %p2649_p11 = por %p229_p10, %p67_p3 }
  0x21   : > { %3312 = sst [smem:[#allocation25_spill]] %s3311_s14  ;;  %p1874_p12 = scmp.ge.s32.totalorder %s2539_s29, 2 }
  0x22   : > { %s3314_s16 = scalar_select %p2649_p11, 1, 0 }
  0x23   : > { %p2131_p13 = scmp.lt.s32.totalorder %s2539_s29, 2  ;;  %s2656_s17 = sand.u32 1, %s2527_s26  }
  0x24   : > { %3315 = sst [smem:[#allocation27_spill]] %s3314_s16  ;;  %s298_s18 = sand.u32 1, %s2539_s29  }
  0x25   : > { %s2083_s19 = smul.u32 72, %s2656_s17  ;;  %p2662_p0 = pnand %p2131_p13, %p2630_p4 }
  0x26   : > { %s2084_s21 = smul.u32 72, %s2535_s28  ;;  %s3317_s1 = sld [smem:[#allocation29_spill]] }
  0x27   : > { %s302_s22 = scalar_lea.vmem [#allocation6], %s2083_s19  ;;  %s2670_s15 = scalar_lea.sflag [#allocation7], %s298_s18 }
  0x28   : > { %s310_s23 = sshll.u32 %s302_s22, 4  ;;  %s3288_s11 = smov 192   ;;  %s311_s23 = int_to_ptr.vmem [resolvable:$true] %s310_s23 }
  0x29   : > { %s3289_s26 = smov 12   ;;  %p1879_p1 = scmp.ge.s32.totalorder %s2539_s29, 1 }
  0x2a   : > { %p385_p2 = scmp.lt.s32.totalorder %s2539_s29, 3  ;;  %s3290_s19 = smul.u32 3, %s2656_s17 }
  0x2b   : > { %s2088_s22 = smul.u32 3, %s2535_s28  ;;  %s3319_s3 = sld [smem:[#allocation30_spill]] }
  0x2c   : > { %s307_s12 = scalar_lea.hbm %s3317_s1, %s2084_s21  ;;  %p2681_p3 = pnand %p1879_p1, %p385_p2 }
  0x2d   : > { %s308_s9 = sshll.u32 %s307_s12, 4  ;;  %s346_s1 = scalar_lea.vmem [#allocation9], %s3290_s19  ;;  %s309_s9 = int_to_ptr.hbm [resolvable:$true] %s308_s9 }
  0x2e   : > { %2114 = dma.hbm_to_vmem [thread:$0]  (!%p2662_p0), %s309_s9, 1152, %s311_s23, %s2670_s15, %s3288_s11, %s3288_s11, %s3289_s26  }
  0x2f   : > { %s354_s16 = sshll.u32 %s346_s1, 4  ;;  %s2691_s9 = scalar_lea.sflag [#allocation10], %s298_s18  ;;  %s355_s16 = int_to_ptr.vmem [resolvable:$true] %s354_s16 }
  0x30   : > { %s1875_s23 = sshll.u32 %s2656_s17, 3  ;;  %s1876_s11 = sshll.u32 %s2535_s28, 3 }
  0x31   : > { %s350_s12 = scalar_lea.hbm %s3319_s3, %s2088_s22  ;;  %s3320_s0 = sld [smem:[#allocation28_spill]] }
  0x32   : > { %s352_s24 = sshll.u32 %s350_s12, 4  ;;  %s279_s3 = scalar_lea.vmem [#allocation3], %s1875_s23  ;;  %s353_s24 = int_to_ptr.hbm [resolvable:$true] %s352_s24 }
  0x33   : > { %2120 = dma.hbm_to_vmem [thread:$0]  (!%p2662_p0), %s353_s24, 48, %s355_s16, %s2691_s9  }
  0x34   : > { %s288_s19 = sshll.u32 %s279_s3, 4  ;;  %s2085_s1 = smul.u32 192, %s2656_s17  ;;  %s289_s19 = int_to_ptr.vmem [resolvable:$true] %s288_s19 }
  0x35   : > { %s276_s18 = scalar_lea.sflag [#allocation4], %s2656_s17  ;;  %s2543_s12 = smov 16  }
  0x36   : > { %s2544_s14 = smov 1   ;;  %s2086_s24 = smul.u32 192, %s2535_s28 }
  0x37   : > { %s285_s10 = scalar_lea.hbm %s3320_s0, %s1876_s11  ;;  %s324_s16 = scalar_lea.vmem [#allocation8], %s2085_s1 }
  0x38   : > { %s286_s29 = sshll.u32 %s285_s10, 4  ;;  %s332_s26 = sshll.u32 %s324_s16, 4  ;;  %s287_s29 = int_to_ptr.hbm [resolvable:$true] %s286_s29  ;;  %s333_s26 = int_to_ptr.vmem [resolvable:$true] %s332_s26 }
  0x39   : > { %2111 = dma.hbm_to_vmem [thread:$0]  (!%p2662_p0), %s287_s29, 128, %s289_s19, %s276_s18, %s2543_s12, %s2543_s12, %s2544_s14  }
  0x3a   : > { %s329_s3 = scalar_lea.hbm %s3278_s2, %s2086_s24  ;;  %s369_s7 = scalar_lea.hbm %s3280_s4, %s2088_s22 }
  0x3b   : > { %s330_s8 = sshll.u32 %s329_s3, 4  ;;  %s371_s6 = sshll.u32 %s369_s7, 4  ;;  %s331_s8 = int_to_ptr.hbm [resolvable:$true] %s330_s8  ;;  %s372_s6 = int_to_ptr.hbm [resolvable:$true] %s371_s6 }
  0x3c   : > { %s3321_s5 = smov 12   ;;  %s3322_s27 = smov 192  }
  0x3d   : > { %2117 = dma.hbm_to_vmem [thread:$0]  (!%p2662_p0), %s331_s8, 3072, %s333_s26, %s2670_s15, %s3322_s27, %s3322_s27, %s3321_s5  }
  0x3e   : > { %s3323_s29 = smul.u32 3, %s2656_s17  ;;  %s2726_s0 = sand.u32 (!%p2681_p3), 1, %s2523_s25  }
  0x3f   : > { %389 = sbr.rel (%p2681_p3) target bundleno = 1553 (0x611), region = 44  ;;  %s1880_s7 = sshll.u32 (!%p2681_p3), %s2726_s0, 3 }
  0x40   : > { %s365_s14 = scalar_lea.vmem [#allocation11], %s3323_s29  ;;  %s392_s22 = scalar_lea.sflag (!%p2681_p3), [#allocation4], %s2726_s0 }
  0x41   : > { %s373_s19 = sshll.u32 %s365_s14, 4  ;;  %s2730_s1 = scalar_lea.vmem (!%p2681_p3), [#allocation3], %s1880_s7  ;;  %s374_s19 = int_to_ptr.vmem [resolvable:$true] %s373_s19 }
  0x42   : > { %2123 = dma.hbm_to_vmem [thread:$0]  (!%p2662_p0), %s372_s6, 48, %s374_s19, %s2691_s9  }
  0x44   : > { %2498 = dma.done.wait (%p2638_p8), %s392_s22, 128  }
  0x45   : > { %2500 = vsyncadd (%p2638_p8), %s392_s22, 4294967168  ;;  %s401_s5 = sand.u32 1, %s2618_s30   ;;  %s2091_s6 = smul.u32 72, %s2726_s0 }
  0x46   : > { %s402_s27 = scalar_lea.sflag [#allocation7], %s401_s5 }
  0x47   : > { %s2738_s15 = scalar_lea.vmem [#allocation6], %s2091_s6 }
  0x48   : > { %2502 = dma.done.wait (%p2638_p8), %s402_s27, 4224  }
  0x49   : > { %2504 = vsyncadd (%p2638_p8), %s402_s27, 4294963072  ;;  %s2092_s17 = smul.u32 192, %s2726_s0  ;;  %s422_s9 = scalar_lea.sflag [#allocation10], %s401_s5 }
  0x4a   : > { %s2093_s20 = smul.u32 3, %s2726_s0 }
  0x4b   : > { %s2746_s21 = scalar_lea.vmem [#allocation8], %s2092_s17 }
  0x4c   : > { %s2750_s30 = scalar_lea.vmem [#allocation9], %s2093_s20 }
  0x4d   : > { %2506 = dma.done.wait (%p2638_p8), %s422_s9, 96  }
  0x4e   : > { %2508 = vsyncadd (%p2638_p8), %s422_s9, 4294967200  ;;  %s3324_s18 = sld [smem:[#allocation22_spill]]  ;;  %v1910_v0 = vld [vmem:[%s2738_s15 + $0x30] sm:$0xf]  ;;  %v2056_v1 = vld [vmem:[%s2738_s15 + $0x38] sm:$0xf0] }
  0x4f   : > { %v2009_v2 = vld [vmem:[%s2746_s21 + $0xa8] sm:$0xf]  ;;  %v1911_v3 = vor.u32 %v2056_v1, %v1910_v0  ;;  %v2080_v4 = vld [vmem:[%s2746_s21 + $0xb0] sm:$0xf0]  ;;  %v1997_v10 = vld [vmem:[%s2746_s21 + $0x90] sm:$0xf] }
  0x50   : > { %v1898_v5 = vld [vmem:[%s2738_s15 + $0x18] sm:$0xf]  ;;  %v2053_v6 = vld [vmem:[%s2738_s15 + $0x20] sm:$0xf0]  ;;  %v2766_v7 = vor.u32 %v2080_v4, %v2009_v2  ;;  %v1886_v14 = vld [vmem:[%s2738_s15] sm:$0xf] }
  0x51   : > { %v1918_v8 = vld [vmem:[%s2738_s15 + $0x38] sm:$0xf]  ;;  %v2057_v9 = vld [vmem:[%s2738_s15 + $0x40] sm:$0xf0]  ;;  %617 = vmatpush.bf16.msra.mxu0 %v1911_v3  ;;  %v1899_v11 = vor.u32 %v2053_v6, %v1898_v5  ;;  %v2050_v15 = vld [vmem:[%s2738_s15 + $0x8] sm:$0xf0] }
  0x52   : > { %v1919_v12 = vor.u32 %v2057_v9, %v1918_v8  ;;  %v2077_v13 = vld [vmem:[%s2746_s21 + $0x98] sm:$0xf0]  ;;  %870 = vmatpush.bf16.msra.mxu3 %v2766_v7  ;;  %v1906_v17 = vld [vmem:[%s2738_s15 + $0x20] sm:$0xf]  ;;  %v2074_v21 = vld [vmem:[%s2746_s21 + $0x80] sm:$0xf0]  ;;  %v1887_v28 = vor.u32 %v2050_v15, %v1886_v14 }
  0x53   : > { %v2775_v16 = vor.u32 %v2077_v13, %v1997_v10  ;;  %v2054_v18 = vld [vmem:[%s2738_s15 + $0x28] sm:$0xf0]  ;;  %v1985_v19 = vld [vmem:[%s2746_s21 + $0x78] sm:$0xf]  ;;  %v2055_v22 = vld [vmem:[%s2738_s15 + $0x34] sm:$0xf] }
  0x54   : > { %p497_p4 = scmp.lt.s32.totalorder %s3324_s18, 1  ;;  %645 = vmatpush.bf16.msra.mxu2 %v1919_v12  ;;  %v1907_v20 = vor.u32 %v2054_v18, %v1906_v17  ;;  %v1912_v23 = vld [vmem:[%s2738_s15 + $0x3c] sm:$0xf0]  ;;  %v2079_v25 = vld [vmem:[%s2746_s21 + $0xac] sm:$0xf]  ;;  %v2789_v31 = vor.u32 %v2074_v21, %v1985_v19  ;;  %s3325_s26 = sld [smem:[#allocation31_spill]] }
  0x55   : > { %v1915_v24 = vor.u32 %v2055_v22, %v1912_v23  ;;  %v2011_v26 = vld [vmem:[%s2746_s21 + $0xb4] sm:$0xf0]  ;;  %618 = vmatpush.bf16.msra.mxu0 %v1899_v11  ;;  %v2051_v29 = vld [vmem:[%s2738_s15 + $0x10] sm:$0xf0]  ;;  %v1973_v30 = vld [vmem:[%s2746_s21 + $0x60] sm:$0xf] }
  0x56   : > { %s2758_s12 = scalar_select %p497_p4, %s3324_s18, 1  ;;  %v1894_v27 = vld [vmem:[%s2738_s15 + $0x8] sm:$0xf]  ;;  %871 = vmatpush.bf16.msra.mxu3 %v2775_v16  ;;  %v2791_v32 = vor.u32 %v2079_v25, %v2011_v26  ;;  %v2071_v33 = vld [vmem:[%s2746_s21 + $0x68] sm:$0xf0]  ;;  %vm609_vm0 = vcmask 392192  }
  0x57   : > { %631 = vmatpush.bf16.msra.mxu1 %v1915_v24  ;;  %v2052_v34 = vld [vmem:[%s2738_s15 + $0x1c] sm:$0xf]  ;;  %v1900_v35 = vld [vmem:[%s2738_s15 + $0x24] sm:$0xf0]  ;;  %v1895_v36 = vor.u32 %v2051_v29, %v1894_v27  ;;  %v509_v40 = vld [vmem:[%s2730_s1] sm:$0x1]  ;;  %v2806_v45 = vor.u32 %v2071_v33, %v1973_v30 }
  0x58   : > { %646 = vmatpush.bf16.msra.mxu2 %v1907_v20  ;;  %v1903_v37 = vor.u32 %v2052_v34, %v1900_v35  ;;  %v2076_v38 = vld [vmem:[%s2746_s21 + $0x94] sm:$0xf]  ;;  %v1999_v39 = vld [vmem:[%s2746_s21 + $0x9c] sm:$0xf0]  ;;  %s1883_s13 = sshll.u32 %s2758_s12, 1  ;;  %vm668_vm1 = vcmask 1043458  }
  0x59   : > { %v510_v41 = vld [vmem:[%s2730_s1 + $0x1] sm:$0x1]  ;;  %619 = vmatpush.bf16.msra.mxu0 %v1887_v28  ;;  %v511_v42 = vld [vmem:[%s2730_s1 + $0x2] sm:$0x1]  ;;  %v512_v43 = vld [vmem:[%s2730_s1 + $0x3] sm:$0x1]  ;;  %v2808_v46 = vor.u32 %v2076_v38, %v1999_v39 }
  0x5a   : > { %v513_v44 = vld [vmem:[%s2730_s1 + $0x4] sm:$0x1]  ;;  %872 = vmatpush.bf16.msra.mxu3 %v2789_v31  ;;  %v514_v47 = vld [vmem:[%s2730_s1 + $0x5] sm:$0x1]  ;;  %538 = vst [vmem:[#allocation1] ss:$9 sm:$0xff] %v509_v40  ;;  %s500_s11 = scalar_lea.vmem %s3325_s26, %s1883_s13 }
  0x5b   : > { %v1961_v48 = vld [vmem:[%s2746_s21 + $0x48] sm:$0xf]  ;;  %v2068_v49 = vld [vmem:[%s2746_s21 + $0x50] sm:$0xf0]  ;;  %632 = vmatpush.bf16.msra.mxu1 %v1903_v37  ;;  %541 = vst [vmem:[#allocation1 + $0x1] ss:$9 sm:$0xff] %v510_v41 }
  0x5c   : > { %647 = vmatpush.bf16.msra.mxu2 %v1895_v36  ;;  %v2049_v50 = vld [vmem:[%s2738_s15 + $0x4] sm:$0xf]  ;;  %v1888_v51 = vld [vmem:[%s2738_s15 + $0xc] sm:$0xf0]  ;;  %544 = vst [vmem:[#allocation1 + $0x2] ss:$9 sm:$0xff] %v511_v42  ;;  %v2822_v57 = vor.u32 %v2068_v49, %v1961_v48 }
  0x5d   : > { %883 = vmatpush.bf16.msrb.mxu0 %v2791_v32  ;;  %v1891_v52 = vor.u32 %v2049_v50, %v1888_v51  ;;  %v2073_v53 = vld [vmem:[%s2746_s21 + $0x7c] sm:$0xf]  ;;  %v1987_v54 = vld [vmem:[%s2746_s21 + $0x84] sm:$0xf0]  ;;  %v515_v55 = vld [vmem:[%s2730_s1 + $0x6] sm:$0x1] }
  0x5e   : > { %v516_v56 = vld [vmem:[%s2730_s1 + $0x7] sm:$0x1]  ;;  %547 = vst [vmem:[#allocation1 + $0x3] ss:$9 sm:$0xff] %v512_v43  ;;  %873 = vmatpush.bf16.msra.mxu3 %v2806_v45  ;;  %v2824_v58 = vor.u32 %v2073_v53, %v1987_v54  ;;  %v1949_v59 = vld [vmem:[%s2746_s21 + $0x30] sm:$0xf] }
  0x5f   : > { %550 = vst [vmem:[#allocation1 + $0x4] ss:$9 sm:$0xff] %v513_v44  ;;  %v2065_v60 = vld [vmem:[%s2746_s21 + $0x38] sm:$0xf0]  ;;  %633 = vmatpush.bf16.msra.mxu1 %v1891_v52  ;;  %v2070_v61 = vld [vmem:[%s2746_s21 + $0x64] sm:$0xf] }
  0x60   : > { %962 = vmatpush.bf16.msrb.mxu2 %v2766_v7  ;;  %553 = vst [vmem:[#allocation1 + $0x5] ss:$9 sm:$0xff] %v514_v47  ;;  %v1975_v62 = vld [vmem:[%s2746_s21 + $0x6c] sm:$0xf0]  ;;  %v1937_v63 = vld [vmem:[%s2746_s21 + $0x18] sm:$0xf]  ;;  %v2839_v0 = vor.u32 %v2065_v60, %v1949_v59 }
  0x61   : > { %884 = vmatpush.bf16.msrb.mxu0 %v2808_v46  ;;  %556 = vst [vmem:[#allocation1 + $0x6] ss:$9 sm:$0xff] %v515_v55  ;;  %v2841_v1 = vor.u32 %v2070_v61, %v1975_v62  ;;  %v2062_v2 = vld [vmem:[%s2746_s21 + $0x20] sm:$0xf0]  ;;  %v2017_v3 = vld [vmem:[%s2746_s21 + $0xb0] sm:$0xf] }
  0x62   : > { %559 = vst [vmem:[#allocation1 + $0x7] ss:$9 sm:$0xff] %v516_v56  ;;  %874 = vmatpush.bf16.msra.mxu3 %v2822_v57  ;;  %v2081_v4 = vld [vmem:[%s2746_s21 + $0xb8] sm:$0xf0]  ;;  %v2067_v5 = vld [vmem:[%s2746_s21 + $0x4c] sm:$0xf]  ;;  %v2856_v12 = vor.u32 %v2062_v2, %v1937_v63 }
  0x63   : > { %v1963_v6 = vld [vmem:[%s2746_s21 + $0x54] sm:$0xf0]  ;;  %v2848_v8 = vor.u32 %v2081_v4, %v2017_v3  ;;  %v507_v9 = vld [vmem:[%s500_s11] sm:$0x3]  ;;  %v2078_v11 = vld [vmem:[%s2746_s21 + $0xa0] sm:$0xf0] }
  0x64   : > { %963 = vmatpush.bf16.msrb.mxu2 %v2775_v16  ;;  %508 = vst [vmem:[#allocation2] sm:$0x3] %v507_v9  ;;  %v2005_v10 = vld [vmem:[%s2746_s21 + $0x98] sm:$0xf]  ;;  %v1925_v13 = vld [vmem:[%s2746_s21] sm:$0xf]  ;;  %v2859_v14 = vor.u32 %v2067_v5, %v1963_v6 }
  0x65   : > { %885 = vmatpush.bf16.msrb.mxu0 %v2824_v58  ;;  %896 = vmatpush.bf16.msrb.mxu1 %v2848_v8  ;;  %v2059_v15 = vld [vmem:[%s2746_s21 + $0x8] sm:$0xf0]  ;;  %v2064_v17 = vld [vmem:[%s2746_s21 + $0x34] sm:$0xf]  ;;  %v1951_v18 = vld [vmem:[%s2746_s21 + $0x3c] sm:$0xf0]  ;;  %v2864_v19 = vor.u32 %v2078_v11, %v2005_v10 }
  0x66   : > { %875 = vmatpush.bf16.msra.mxu3 %v2839_v0  ;;  %v1993_v21 = vld [vmem:[%s2746_s21 + $0x80] sm:$0xf]  ;;  %v2075_v22 = vld [vmem:[%s2746_s21 + $0x88] sm:$0xf0]  ;;  %v2873_v23 = vor.u32 %v2059_v15, %v1925_v13  ;;  %v2876_v24 = vor.u32 %v2064_v17, %v1951_v18  ;;  %v2061_v26 = vld [vmem:[%s2746_s21 + $0x1c] sm:$0xf] }
  0x67   : > { %v2882_v27 = vor.u32 %v2075_v22, %v1993_v21  ;;  %v1939_v28 = vld [vmem:[%s2746_s21 + $0x24] sm:$0xf0]  ;;  %v2072_v30 = vld [vmem:[%s2746_s21 + $0x70] sm:$0xf0]  ;;  %v2058_v35 = vld [vmem:[%s2746_s21 + $0x4] sm:$0xf] }
  0x68   : > { %964 = vmatpush.bf16.msrb.mxu2 %v2789_v31  ;;  %v1981_v29 = vld [vmem:[%s2746_s21 + $0x68] sm:$0xf]  ;;  %v2892_v34 = vor.u32 %v2061_v26, %v1939_v28  ;;  %v1927_v37 = vld [vmem:[%s2746_s21 + $0xc] sm:$0xf0]  ;;  %v2069_v39 = vld [vmem:[%s2746_s21 + $0x58] sm:$0xf0] }
  0x69   : > { %886 = vmatpush.bf16.msrb.mxu0 %v2841_v1  ;;  %v560_v20 = vld [vmem:[#allocation1] sm:$0xff]  ;;  %897 = vmatpush.bf16.msrb.mxu1 %v2864_v19  ;;  %v2896_v36 = vor.u32 %v2072_v30, %v1981_v29  ;;  %v1969_v38 = vld [vmem:[%s2746_s21 + $0x50] sm:$0xf]  ;;  %v2904_v40 = vor.u32 %v2058_v35, %v1927_v37  ;;  %v2066_v43 = vld [vmem:[%s2746_s21 + $0x40] sm:$0xf0]  ;;  %vm673_vm2 = vcmask 1045508  }
  0x6a   : > { %1922 = vmatmul.msk.bf16.vlgmr.msra.gmra.mxu2 %vm609_vm0, %v560_v20  ;;  %1921 = vmatmul.msk.bf16.vlgmr.msra.gmra.mxu1 %vm609_vm0, %v560_v20  ;;  %v2907_v41 = vor.u32 %v2069_v39, %v1969_v38  ;;  %v1957_v42 = vld [vmem:[%s2746_s21 + $0x38] sm:$0xf]  ;;  %v1945_v47 = vld [vmem:[%s2746_s21 + $0x20] sm:$0xf]  ;;  %v2063_v48 = vld [vmem:[%s2746_s21 + $0x28] sm:$0xf0] }
  0x6b   : > { %1920 = vmatmul.msk.bf16.vlgmr.msra.gmra.mxu0 %vm609_vm0, %v560_v20  ;;  %876 = vmatpush.bf16.msra.mxu3 %v2856_v12  ;;  %v2878_v25 = vld [vmem:[#allocation2] sm:$0x3]  ;;  %v2915_v44 = vor.u32 %v2066_v43, %v1957_v42  ;;  %v2924_v49 = vor.u32 %v2063_v48, %v1945_v47  ;;  %v1933_v50 = vld [vmem:[%s2746_s21 + $0x8] sm:$0xf]  ;;  %v2060_v51 = vld [vmem:[%s2746_s21 + $0x10] sm:$0xf0] }
  0x6c   : > { %965 = vmatpush.bf16.msrb.mxu2 %v2806_v45  ;;  %v741_v33 = vpack.c.bf16 %v2878_v25, %v2878_v25  ;;  %v2932_v52 = vor.u32 %v2060_v51, %v1933_v50  ;;  %v529_v53 = vld [vmem:[%s2750_s30] sm:$0x7]  ;;  %vm677_vm3 = vcmask 1045504   ;;  %vm666_vm4 = vcmask 1043456   ;;  %s435_s23 = scalar_lea.vmem [#allocation11], %s2093_s20  ;;  %s1881_s3 = sshll.u32 %s2726_s0, 4 }
  0x6d   : > { %887 = vmatpush.bf16.msrb.mxu0 %v2859_v14  ;;  %898 = vmatpush.bf16.msrb.mxu1 %v2882_v27  ;;  %v532_v54 = vperm.slane %v529_v53, 1  ;;  %v531_v55 = vperm.slane %v529_v53, 0  ;;  %v533_v63 = vperm.slane %v529_v53, 2  ;;  %v732_v10 = vld [vmem:[%s435_s23] sm:$0x7]  ;;  %vm670_vm5 = vcmask 1045506  }
  0x6e   : > { %vm664_vm6 = vcmask 1041408   ;;  %v2989_v20 = vperm.slane %v732_v10, 0  ;;  %v3000_v38 = vperm.slane %v732_v10, 1  ;;  %s3027_s8 = scalar_lea.vmem [#allocation12], %s1881_s3  ;;  %s2082_s10 = sshll.u32 %s3324_s18, 4 }
  0x6f   : > { %877 = vmatpush.bf16.msra.mxu3 %v2873_v23  ;;  %s3326_s19 = sld [smem:[#allocation32_spill]]  ;;  %s1882_s22 = sshll.u32 %s2726_s0, 1 }
  0x70   : > { %966 = vmatpush.bf16.msrb.mxu2 %v2822_v57  ;;  %s2046_s1 = sshll.u32 %s3324_s18, 1  ;;  %s1637_s5 = sshll.u32 %s3027_s8, 4  ;;  %s3220_s5 = int_to_ptr.vmem [resolvable:$true] %s1637_s5 }
  0x71   : > { %888 = vmatpush.bf16.msrb.mxu0 %v2876_v24  ;;  %899 = vmatpush.bf16.msrb.mxu1 %v2896_v36  ;;  %s3327_s17 = sld [smem:[#allocation33_spill]]  ;;  %s495_s9 = scalar_lea.vmem [#allocation13], %s1882_s22 }
  0x72   : > { %878 = vmatmul.bf16.vlgmr.msra.gmra.mxu3 %v741_v33  ;;  %s1654_s30 = sshll.u32 %s495_s9, 4  ;;  %s1618_s18 = scalar_lea.sflag [#allocation5], %s2726_s0  ;;  %s3223_s30 = int_to_ptr.vmem [resolvable:$true] %s1654_s30 }
  0x73   : > { %975 = vmatpush.bf16.msrb.mxu3 %v2791_v32 }
  0x74   : > { %967 = vmatpush.bf16.msrb.mxu2 %v2839_v0 }
  0x75   : > { %889 = vmatpush.bf16.msrb.mxu0 %v2892_v34  ;;  %900 = vmatpush.bf16.msrb.mxu1 %v2907_v41  ;;  %s1636_s7 = scalar_lea.hbm %s3326_s19, %s2082_s10  ;;  %s2437_s11 = scalar_lea.hbm %s3326_s19, 32 }
  0x76   : > { %s1639_s6 = sshll.u32 %s1636_s7, 4  ;;  %s1640_s6 = int_to_ptr.hbm [resolvable:$true] %s1639_s6 }
  0x77   : > { %976 = vmatpush.bf16.msrb.mxu3 %v2808_v46  ;;  %s1652_s20 = scalar_lea.hbm %s3327_s17, %s2046_s1  ;;  %s2431_s13 = sshra.s32 %s1640_s6, 4  ;;  %s2432_s13 = int_to_ptr.hbm [resolvable:$true] %s2431_s13 }
  0x78   : > { %968 = vmatpush.bf16.msrb.mxu2 %v2856_v12  ;;  %s1656_s12 = sshll.u32 %s1652_s20, 4  ;;  %s2433_s24 = scalar_lea.hbm %s2432_s13, 16  ;;  %s3225_s12 = int_to_ptr.hbm [resolvable:$true] %s1656_s12 }
  0x79   : > { %890 = vmatpush.bf16.msrb.mxu0 %v2904_v40  ;;  %901 = vmatpush.bf16.msrb.mxu1 %v2915_v44  ;;  %p2434_p5 = scmp.ne.s32.totalorder %s2432_s13, %s2433_s24  ;;  %p2438_p8 = scmp.lt.s32.totalorder %s2432_s13, %s3326_s19 }
  0x7a   : > { %p2439_p10 = scmp.lt.s32.totalorder %s2437_s11, %s2433_s24 }
  0x7b   : > { %977 = vmatpush.bf16.msrb.mxu3 %v2824_v58  ;;  %p2435_p6 = pnand %p2434_p5, %p2642_p9 }
  0x7c   : > { %969 = vmatpush.bf16.msrb.mxu2 %v2873_v23  ;;  %891 = vmatmul.bf16.vlgmr.msrb.gmra.mxu0 %v741_v33  ;;  %p2440_p13 = por %p2439_p10, %p2438_p8 }
  0x7d   : > { %988 = vmatpush.bf16.msra.mxu0 %v2848_v8  ;;  %902 = vmatpush.bf16.msrb.mxu1 %v2924_v49  ;;  %p2436_p7 = pneg %p2435_p6 }
  0x7f   : > { %978 = vmatpush.bf16.msrb.mxu3 %v2841_v1  ;;  %p2441_p0 = pnand %p2440_p13, %p2436_p7 }
  0x80   : > { %1068 = vmatpush.bf16.msra.mxu2 %v2791_v32 }
  0x81   : > { %989 = vmatpush.bf16.msra.mxu0 %v2864_v19  ;;  %903 = vmatpush.bf16.msrb.mxu1 %v2932_v52 }
  0x83   : > { %979 = vmatpush.bf16.msrb.mxu3 %v2859_v14 }
  0x84   : > { %1069 = vmatpush.bf16.msra.mxu2 %v2808_v46  ;;  %904 = vmatmul.bf16.vlgmr.msrb.gmra.mxu1 %v741_v33 }
  0x85   : > { %990 = vmatpush.bf16.msra.mxu0 %v2882_v27  ;;  %1055 = vmatpush.bf16.msra.mxu1 %v2766_v7 }
  0x87   : > { %980 = vmatpush.bf16.msrb.mxu3 %v2876_v24 }
  0x88   : > { %1070 = vmatpush.bf16.msra.mxu2 %v2824_v58 }
  0x89   : > { %991 = vmatpush.bf16.msra.mxu0 %v2896_v36  ;;  %1056 = vmatpush.bf16.msra.mxu1 %v2775_v16 }
  0x8b   : > { %981 = vmatpush.bf16.msrb.mxu3 %v2892_v34 }
  0x8c   : > { %1071 = vmatpush.bf16.msra.mxu2 %v2841_v1 }
  0x8d   : > { %992 = vmatpush.bf16.msra.mxu0 %v2907_v41  ;;  %1057 = vmatpush.bf16.msra.mxu1 %v2789_v31 }
  0x8f   : > { %982 = vmatpush.bf16.msrb.mxu3 %v2904_v40 }
  0x90   : > { %1072 = vmatpush.bf16.msra.mxu2 %v2859_v14 }
  0x91   : > { %993 = vmatpush.bf16.msra.mxu0 %v2915_v44  ;;  %1058 = vmatpush.bf16.msra.mxu1 %v2806_v45 }
  0x93   : > { %1081 = vmatpush.bf16.msra.mxu3 %v2848_v8 }
  0x94   : > { %1073 = vmatpush.bf16.msra.mxu2 %v2876_v24 }
  0x95   : > { %994 = vmatpush.bf16.msra.mxu0 %v2924_v49  ;;  %1059 = vmatpush.bf16.msra.mxu1 %v2822_v57 }
  0x97   : > { %1082 = vmatpush.bf16.msra.mxu3 %v2864_v19 }
  0x98   : > { %1074 = vmatpush.bf16.msra.mxu2 %v2892_v34 }
  0x99   : > { %995 = vmatpush.bf16.msra.mxu0 %v2932_v52  ;;  %1060 = vmatpush.bf16.msra.mxu1 %v2839_v0 }
  0x9b   : > { %1083 = vmatpush.bf16.msra.mxu3 %v2882_v27 }
  0x9c   : > { %1075 = vmatpush.bf16.msra.mxu2 %v2904_v40 }
  0x9d   : > { %1148 = vmatpush.bf16.msrb.mxu0 %v2766_v7  ;;  %1061 = vmatpush.bf16.msra.mxu1 %v2856_v12 }
  0x9f   : > { %1084 = vmatpush.bf16.msra.mxu3 %v2896_v36 }
  0xa1   : > { %1149 = vmatpush.bf16.msrb.mxu0 %v2775_v16  ;;  %1062 = vmatpush.bf16.msra.mxu1 %v2873_v23 }
  0xa3   : > { %1085 = vmatpush.bf16.msra.mxu3 %v2907_v41 }
  0xa5   : > { %1150 = vmatpush.bf16.msrb.mxu0 %v2789_v31  ;;  %1161 = vmatpush.bf16.msrb.mxu1 %v2791_v32 }
  0xa7   : > { %1086 = vmatpush.bf16.msra.mxu3 %v2915_v44 }
  0xa9   : > { %1151 = vmatpush.bf16.msrb.mxu0 %v2806_v45  ;;  %1162 = vmatpush.bf16.msrb.mxu1 %v2808_v46 }
  0xab   : > { %1087 = vmatpush.bf16.msra.mxu3 %v2924_v49 }
  0xad   : > { %1152 = vmatpush.bf16.msrb.mxu0 %v2822_v57  ;;  %1163 = vmatpush.bf16.msrb.mxu1 %v2824_v58 }
  0xaf   : > { %1088 = vmatpush.bf16.msra.mxu3 %v2932_v52 }
  0xb1   : > { %1153 = vmatpush.bf16.msrb.mxu0 %v2839_v0  ;;  %1164 = vmatpush.bf16.msrb.mxu1 %v2841_v1 }
  0xb5   : > { %1154 = vmatpush.bf16.msrb.mxu0 %v2856_v12  ;;  %1165 = vmatpush.bf16.msrb.mxu1 %v2859_v14 }
  0xb9   : > { %1155 = vmatpush.bf16.msrb.mxu0 %v2873_v23  ;;  %1166 = vmatpush.bf16.msrb.mxu1 %v2876_v24 }
  0xbd   : > { %1167 = vmatpush.bf16.msrb.mxu1 %v2892_v34 }
  0xc1   : > { %1168 = vmatpush.bf16.msrb.mxu1 %v2904_v40 }
  0xe7   : > { %v635_v56 = vpop.f32.mrf.mxu1 }
  0xe8   : > { %v636_v59 = vadd.f32 %v635_v56, %v532_v54  ;;  %v621_v60 = vpop.f32.mrf.mxu0 }
  0xe9   : > { %v622_v61 = vadd.f32 %v621_v60, %v531_v55 }
  0xea   : > { %v660_v62 = vrot.slane %v636_v59, 6 }
  0xec   : > { %v669_v2 = vsel %vm668_vm1, %v622_v61, %v660_v62  ;;  %v674_v3 = vsel %vm673_vm2, %v622_v61, %v660_v62  ;;  %v678_v4 = vsel %vm677_vm3, %v660_v62, %v622_v61  ;;  %v665_v26 = vsel %vm664_vm6, %v622_v61, %v660_v62 }
  0xed   : > { %v649_v5 = vpop.f32.mrf.mxu2 }
  0xee   : > { %v650_v6 = vadd.f32 %v649_v5, %v533_v63 }
  0xef   : > { %v637_v9 = vpop.f32.mrf.mxu1 }
  0xf0   : > { %v661_v11 = vrot.slane %v650_v6, 4  ;;  %v638_v13 = vadd.f32 %v637_v9, %v532_v54  ;;  %v623_v15 = vpop.f32.mrf.mxu0 }
  0xf1   : > { %v624_v17 = vadd.f32 %v623_v15, %v531_v55 }
  0xf2   : > { %v662_v18 = vrot.slane %v638_v13, 6  ;;  %v2992_v21 = vsel %vm670_vm5, %v669_v2, %v661_v11  ;;  %v2995_v22 = vsel %vm666_vm4, %v661_v11, %v674_v3  ;;  %v667_v42 = vsel %vm666_vm4, %v665_v26, %v661_v11 }
  0xf3   : > { %v3005_v47 = vsel %vm670_vm5, %v661_v11, %v678_v4  ;;  %v929_v54 = vrot.slane %v667_v42, 2  ;;  %v3020_v26 = vperm.slane %v732_v10, 2 }
  0xf4   : > { %v681_v28 = vsel %vm664_vm6, %v624_v17, %v662_v18  ;;  %v683_v29 = vsel %vm668_vm1, %v624_v17, %v662_v18  ;;  %v686_v30 = vsel %vm673_vm2, %v624_v17, %v662_v18  ;;  %v689_v33 = vsel %vm677_vm3, %v662_v18, %v624_v17 }
  0xf5   : > { %v651_v35 = vpop.f32.mrf.mxu2  ;;  %v879_v37 = vpop.f32.mrf.mxu3 }
  0xf6   : > { %v652_v39 = vadd.f32 %v651_v35, %v533_v63  ;;  %v880_v43 = vadd.f32 %v879_v37, %v2989_v20 }
  0xf8   : > { %v663_v48 = vrot.slane %v652_v39, 4  ;;  %v909_v50 = vadd.f32 %v880_v43, %v667_v42 }
  0xf9   : > { %v892_v51 = vpop.f32.mrf.mxu0 }
  0xfa   : > { %v893_v53 = vadd.f32 %v892_v51, %v3000_v38  ;;  %v2019_v55 = vmul.f32 -1.442695, %v909_v50  ;;  %v3009_v56 = vsel %vm666_vm4, %v681_v28, %v663_v48  ;;  %v3012_v59 = vsel %vm670_vm5, %v683_v29, %v663_v48 }
  0xfb   : > { %v3015_v60 = vsel %vm666_vm4, %v663_v48, %v686_v30  ;;  %v3018_v62 = vsel %vm670_vm5, %v663_v48, %v689_v33 }
  0xfc   : > { %v931_v61 = vadd.f32 %v929_v54, %v893_v53  ;;  %2187 = vpow2.f32 %v2019_v55  ;;  %v952_v55 = vrot.slane %v667_v42, 4 }
  0xfd   : > { %v881_v2 = vpop.f32.mrf.mxu3 }
  0xfe   : > { %v2020_v63 = vmul.f32 -1.442695, %v931_v61 }
 0x100   : > { %2189 = vpow2.f32 %v2020_v63 }
 0x101   : > { %v894_v3 = vpop.f32.mrf.mxu0  ;;  %v905_v6 = vpop.f32.mrf.mxu1 }
 0x102   : > { %v2188_v4 = vpop.eup %2187  ;;  %v906_v39 = vadd.f32 %v905_v6, %v3020_v26 }
 0x103   : > { %v913_v5 = vadd.f32 1.0, %v2188_v4 }
 0x105   : > { %2191 = vrcp.f32 %v913_v5  ;;  %v925_v30 = vand.u32 2147483648, %v913_v5  ;;  %v923_v35 = vand.u32 2147483647, %v913_v5  ;;  %vm919_vm8 = vweird.f32 %v913_v5 }
 0x106   : > { %v2190_v9 = vpop.eup %2189 }
 0x107   : > { %v935_v11 = vadd.f32 1.0, %v2190_v9  ;;  %v926_v48 = vor.u32 1.1754944e-38, %v925_v30  ;;  %vm924_vm10 = vcmp.eq.f32.partialorder %v923_v35, 8.507059e+37 }
 0x109   : > { %2193 = vrcp.f32 %v935_v11  ;;  %v907_v17 = vpop.f32.mrf.mxu1  ;;  %v947_v61 = vand.u32 2147483648, %v935_v11  ;;  %vm941_vm12 = vweird.f32 %v935_v11  ;;  %v945_v63 = vand.u32 2147483647, %v935_v11 }
 0x10b   : > { %v2192_v13 = vpop.eup %2191  ;;  %v948_v4 = vor.u32 1.1754944e-38, %v947_v61  ;;  %vm946_vm14 = vcmp.eq.f32.partialorder %v945_v63, 8.507059e+37 }
 0x10c   : > { %v915_v15 = vmul.f32 %v2192_v13, %v913_v5  ;;  %vm920_vm7 = vweird.f32 %v2192_v13 }
 0x10d   : > { %vm921_vm9 = vmor %vm919_vm8, %vm920_vm7 }
 0x10e   : > { %v916_v28 = vsub.f32 1.0, %v915_v15 }
 0x10f   : > { %v2194_v18 = vpop.eup %2193 }
 0x110   : > { %v937_v29 = vmul.f32 %v2194_v18, %v935_v11  ;;  %v917_v33 = vmul.f32 %v2192_v13, %v916_v28  ;;  %vm942_vm11 = vweird.f32 %v2194_v18  ;;  %v672_v11 = vrot.slane %v2992_v21, 2 }
 0x111   : > { %vm943_vm13 = vmor %vm941_vm12, %vm942_vm11 }
 0x112   : > { %v938_v37 = vsub.f32 1.0, %v937_v29  ;;  %v918_v43 = vadd.f32 %v2192_v13, %v917_v33  ;;  %v1021_v33 = vrot.slane %v672_v11, 2 }
 0x114   : > { %v939_v50 = vmul.f32 %v2194_v18, %v938_v37  ;;  %v922_v51 = vsel %vm921_vm9, %v2192_v13, %v918_v43 }
 0x115   : > { %v927_v53 = vsel %vm924_vm10, %v926_v48, %v922_v51 }
 0x116   : > { %v940_v10 = vadd.f32 %v2194_v18, %v939_v50  ;;  %v951_v54 = vmul.f32 %v927_v53, %v906_v39 }
 0x118   : > { %v954_v2 = vadd.f32 %v952_v55, %v951_v54  ;;  %v944_v3 = vsel %vm943_vm13, %v2194_v18, %v940_v10 }
 0x119   : > { %v949_v5 = vsel %vm946_vm14, %v948_v4, %v944_v3 }
 0x11a   : > { %2195 = vtanh.f32 %v954_v2  ;;  %v956_v6 = vsub.f32 1.0, %v949_v5  ;;  %v958_v15 = vmul.f32 %v949_v5, %v2878_v25 }
 0x120   : > { %v2196_v9 = vpop.eup %2195 }
 0x121   : > { %v957_v13 = vmul.f32 %v2196_v9, %v956_v6 }
 0x123   : > { %v3025_v17 = vadd.f32 %v958_v15, %v957_v13 }
 0x125   : > { %960 = vst [vmem:[%s3027_s8] sm:$0x3] %v3025_v17  ;;  %v961_v42 = vpack.c.bf16 %v3025_v17, %v3025_v17 }
 0x127   : > { %970 = vmatmul.bf16.vlgmr.msrb.gmra.mxu2 %v961_v42  ;;  %983 = vmatmul.bf16.vlgmr.msrb.gmra.mxu3 %v961_v42 }
 0x128   : > { %996 = vmatmul.bf16.vlgmr.msra.gmra.mxu0 %v961_v42  ;;  %1174 = vmatpush.bf16.msrb.mxu2 %v2848_v8 }
 0x129   : > { %1241 = vmatpush.bf16.msrb.mxu3 %v2766_v7  ;;  %1254 = vmatpush.bf16.msra.mxu0 %v2791_v32 }
 0x12c   : > { %1175 = vmatpush.bf16.msrb.mxu2 %v2864_v19 }
 0x12d   : > { %1242 = vmatpush.bf16.msrb.mxu3 %v2775_v16  ;;  %1255 = vmatpush.bf16.msra.mxu0 %v2808_v46 }
 0x130   : > { %1176 = vmatpush.bf16.msrb.mxu2 %v2882_v27 }
 0x131   : > { %1243 = vmatpush.bf16.msrb.mxu3 %v2789_v31  ;;  %1256 = vmatpush.bf16.msra.mxu0 %v2824_v58 }
 0x134   : > { %1177 = vmatpush.bf16.msrb.mxu2 %v2896_v36 }
 0x135   : > { %1244 = vmatpush.bf16.msrb.mxu3 %v2806_v45  ;;  %1257 = vmatpush.bf16.msra.mxu0 %v2841_v1 }
 0x138   : > { %1178 = vmatpush.bf16.msrb.mxu2 %v2907_v41 }
 0x139   : > { %1245 = vmatpush.bf16.msrb.mxu3 %v2822_v57  ;;  %1258 = vmatpush.bf16.msra.mxu0 %v2859_v14 }
 0x13c   : > { %1179 = vmatpush.bf16.msrb.mxu2 %v2915_v44 }
 0x13d   : > { %1246 = vmatpush.bf16.msrb.mxu3 %v2839_v0  ;;  %1259 = vmatpush.bf16.msra.mxu0 %v2876_v24 }
 0x140   : > { %1180 = vmatpush.bf16.msrb.mxu2 %v2924_v49 }
 0x141   : > { %1247 = vmatpush.bf16.msrb.mxu3 %v2856_v12  ;;  %1260 = vmatpush.bf16.msra.mxu0 %v2892_v34 }
 0x144   : > { %1181 = vmatpush.bf16.msrb.mxu2 %v2932_v52 }
 0x145   : > { %1248 = vmatpush.bf16.msrb.mxu3 %v2873_v23  ;;  %1261 = vmatpush.bf16.msra.mxu0 %v2904_v40 }
 0x1a5   : > { %v997_v25 = vpop.f32.mrf.mxu0 }
 0x1aa   : > { %v971_v18 = vpop.f32.mrf.mxu2  ;;  %v984_v28 = vpop.f32.mrf.mxu3 }
 0x1ab   : > { %v972_v29 = vadd.f32 %v971_v18, %v2989_v20  ;;  %v985_v30 = vadd.f32 %v984_v28, %v3000_v38  ;;  %v998_v18 = vadd.f32 %v997_v25, %v3020_v26 }
 0x1ad   : > { %v1001_v35 = vadd.f32 %v972_v29, %v672_v11  ;;  %v1023_v37 = vadd.f32 %v1021_v33, %v985_v30  ;;  %v999_v39 = vpop.f32.mrf.mxu0 }
 0x1af   : > { %v2021_v43 = vmul.f32 -1.442695, %v1001_v35  ;;  %v2022_v48 = vmul.f32 -1.442695, %v1023_v37  ;;  %v1044_v35 = vrot.slane %v672_v11, 4 }
 0x1b1   : > { %2197 = vpow2.f32 %v2021_v43 }
 0x1b2   : > { %2199 = vpow2.f32 %v2022_v48  ;;  %v973_v50 = vpop.f32.mrf.mxu2  ;;  %v986_v51 = vpop.f32.mrf.mxu3 }
 0x1b7   : > { %v2198_v53 = vpop.eup %2197 }
 0x1b8   : > { %v2200_v10 = vpop.eup %2199  ;;  %v1005_v54 = vadd.f32 1.0, %v2198_v53 }
 0x1b9   : > { %v1027_v21 = vadd.f32 1.0, %v2200_v10 }
 0x1ba   : > { %2201 = vrcp.f32 %v1005_v54  ;;  %v1017_v4 = vand.u32 2147483648, %v1005_v54  ;;  %v1015_v9 = vand.u32 2147483647, %v1005_v54  ;;  %vm1011_vm0 = vweird.f32 %v1005_v54 }
 0x1bb   : > { %2203 = vrcp.f32 %v1027_v21  ;;  %v1039_v37 = vand.u32 2147483648, %v1027_v21  ;;  %vm1033_vm4 = vweird.f32 %v1027_v21  ;;  %v1037_v39 = vand.u32 2147483647, %v1027_v21 }
 0x1bc   : > { %v1018_v42 = vor.u32 1.1754944e-38, %v1017_v4  ;;  %vm1016_vm2 = vcmp.eq.f32.partialorder %v1015_v9, 8.507059e+37 }
 0x1bd   : > { %v1040_v50 = vor.u32 1.1754944e-38, %v1039_v37  ;;  %vm1038_vm6 = vcmp.eq.f32.partialorder %v1037_v39, 8.507059e+37 }
 0x1c0   : > { %v2202_v55 = vpop.eup %2201 }
 0x1c1   : > { %v2204_v61 = vpop.eup %2203  ;;  %v1007_v63 = vmul.f32 %v2202_v55, %v1005_v54  ;;  %vm1012_vm15 = vweird.f32 %v2202_v55 }
 0x1c2   : > { %v1029_v2 = vmul.f32 %v2204_v61, %v1027_v21  ;;  %vm1013_vm1 = vmor %vm1011_vm0, %vm1012_vm15  ;;  %vm1034_vm3 = vweird.f32 %v2204_v61  ;;  %v676_v21 = vrot.slane %v2995_v22, 4 }
 0x1c3   : > { %v1008_v3 = vsub.f32 1.0, %v1007_v63  ;;  %vm1035_vm5 = vmor %vm1033_vm4, %vm1034_vm3 }
 0x1c4   : > { %v1030_v5 = vsub.f32 1.0, %v1029_v2 }
 0x1c5   : > { %v1009_v6 = vmul.f32 %v2202_v55, %v1008_v3 }
 0x1c6   : > { %v1031_v13 = vmul.f32 %v2204_v61, %v1030_v5  ;;  %v1114_v5 = vrot.slane %v676_v21, 2 }
 0x1c7   : > { %v1010_v15 = vadd.f32 %v2202_v55, %v1009_v6 }
 0x1c8   : > { %v1032_v30 = vadd.f32 %v2204_v61, %v1031_v13 }
 0x1c9   : > { %v1014_v28 = vsel %vm1013_vm1, %v2202_v55, %v1010_v15 }
 0x1ca   : > { %v1019_v29 = vsel %vm1016_vm2, %v1018_v42, %v1014_v28  ;;  %v1036_v48 = vsel %vm1035_vm5, %v2204_v61, %v1032_v30 }
 0x1cb   : > { %v1043_v33 = vmul.f32 %v1019_v29, %v998_v18  ;;  %v1041_v51 = vsel %vm1038_vm6, %v1040_v50, %v1036_v48 }
 0x1cc   : > { %v1048_v53 = vsub.f32 1.0, %v1041_v51  ;;  %v1050_v54 = vmul.f32 %v1041_v51, %v3025_v17 }
 0x1cd   : > { %v1046_v43 = vadd.f32 %v1044_v35, %v1043_v33 }
 0x1cf   : > { %2205 = vtanh.f32 %v1046_v43 }
 0x1d5   : > { %v2206_v25 = vpop.eup %2205 }
 0x1d6   : > { %v1049_v10 = vmul.f32 %v2206_v25, %v1048_v53 }
 0x1d8   : > { %v3062_v55 = vadd.f32 %v1050_v54, %v1049_v10 }
 0x1da   : > { %2023 = vst [vmem:[%s3027_s8 + $0x2] sm:$0x3] %v3062_v55  ;;  %v1054_v11 = vpack.c.bf16 %v3062_v55, %v3062_v55 }
 0x1dc   : > { %1063 = vmatmul.bf16.vlgmr.msra.gmra.mxu1 %v1054_v11  ;;  %1076 = vmatmul.bf16.vlgmr.msra.gmra.mxu2 %v1054_v11 }
 0x1dd   : > { %1089 = vmatmul.bf16.vlgmr.msra.gmra.mxu3 %v1054_v11  ;;  %1267 = vmatpush.bf16.msra.mxu1 %v2848_v8 }
 0x1de   : > { %1334 = vmatpush.bf16.msra.mxu2 %v2766_v7  ;;  %1347 = vmatpush.bf16.msra.mxu3 %v2791_v32 }
 0x1e1   : > { %1268 = vmatpush.bf16.msra.mxu1 %v2864_v19 }
 0x1e2   : > { %1335 = vmatpush.bf16.msra.mxu2 %v2775_v16  ;;  %1348 = vmatpush.bf16.msra.mxu3 %v2808_v46 }
 0x1e5   : > { %1269 = vmatpush.bf16.msra.mxu1 %v2882_v27 }
 0x1e6   : > { %1336 = vmatpush.bf16.msra.mxu2 %v2789_v31  ;;  %1349 = vmatpush.bf16.msra.mxu3 %v2824_v58 }
 0x1e9   : > { %1270 = vmatpush.bf16.msra.mxu1 %v2896_v36 }
 0x1ea   : > { %1337 = vmatpush.bf16.msra.mxu2 %v2806_v45  ;;  %1350 = vmatpush.bf16.msra.mxu3 %v2841_v1 }
 0x1ed   : > { %1271 = vmatpush.bf16.msra.mxu1 %v2907_v41 }
 0x1ee   : > { %1338 = vmatpush.bf16.msra.mxu2 %v2822_v57  ;;  %1351 = vmatpush.bf16.msra.mxu3 %v2859_v14 }
 0x1f1   : > { %1272 = vmatpush.bf16.msra.mxu1 %v2915_v44 }
 0x1f2   : > { %1339 = vmatpush.bf16.msra.mxu2 %v2839_v0  ;;  %1352 = vmatpush.bf16.msra.mxu3 %v2876_v24 }
 0x1f5   : > { %1273 = vmatpush.bf16.msra.mxu1 %v2924_v49 }
 0x1f6   : > { %1340 = vmatpush.bf16.msra.mxu2 %v2856_v12  ;;  %1353 = vmatpush.bf16.msra.mxu3 %v2892_v34 }
 0x1f9   : > { %1274 = vmatpush.bf16.msra.mxu1 %v2932_v52 }
 0x1fa   : > { %1341 = vmatpush.bf16.msra.mxu2 %v2873_v23  ;;  %1354 = vmatpush.bf16.msra.mxu3 %v2904_v40 }
 0x259   : > { %v1064_v17 = vpop.f32.mrf.mxu1 }
 0x25a   : > { %v1065_v61 = vadd.f32 %v1064_v17, %v2989_v20 }
 0x25c   : > { %v1094_v63 = vadd.f32 %v1065_v61, %v676_v21  ;;  %v1137_v61 = vrot.slane %v676_v21, 4 }
 0x25e   : > { %v2024_v2 = vmul.f32 -1.442695, %v1094_v63 }
 0x25f   : > { %v1077_v3 = vpop.f32.mrf.mxu2 }
 0x260   : > { %2207 = vpow2.f32 %v2024_v2  ;;  %v1078_v4 = vadd.f32 %v1077_v3, %v3000_v38  ;;  %v1090_v6 = vpop.f32.mrf.mxu3 }
 0x261   : > { %v1066_v9 = vpop.f32.mrf.mxu1  ;;  %v1091_v54 = vadd.f32 %v1090_v6, %v3020_v26 }
 0x262   : > { %v1116_v13 = vadd.f32 %v1114_v5, %v1078_v4 }
 0x264   : > { %v2025_v15 = vmul.f32 -1.442695, %v1116_v13 }
 0x266   : > { %v2208_v42 = vpop.eup %2207  ;;  %2209 = vpow2.f32 %v2025_v15 }
 0x267   : > { %v1098_v18 = vadd.f32 1.0, %v2208_v42  ;;  %v1079_v28 = vpop.f32.mrf.mxu2 }
 0x268   : > { %v1092_v29 = vpop.f32.mrf.mxu3 }
 0x269   : > { %2211 = vrcp.f32 %v1098_v18  ;;  %v1110_v39 = vand.u32 2147483648, %v1098_v18  ;;  %v1108_v48 = vand.u32 2147483647, %v1098_v18  ;;  %vm1104_vm8 = vweird.f32 %v1098_v18 }
 0x26b   : > { %v1111_v25 = vor.u32 1.1754944e-38, %v1110_v39  ;;  %vm1109_vm10 = vcmp.eq.f32.partialorder %v1108_v48, 8.507059e+37 }
 0x26c   : > { %v2210_v22 = vpop.eup %2209 }
 0x26d   : > { %v1120_v30 = vadd.f32 1.0, %v2210_v22 }
 0x26f   : > { %v2212_v33 = vpop.eup %2211  ;;  %2213 = vrcp.f32 %v1120_v30  ;;  %v1132_v2 = vand.u32 2147483648, %v1120_v30  ;;  %v1130_v4 = vand.u32 2147483647, %v1120_v30  ;;  %vm1126_vm12 = vweird.f32 %v1120_v30 }
 0x270   : > { %v1100_v35 = vmul.f32 %v2212_v33, %v1098_v18  ;;  %vm1105_vm7 = vweird.f32 %v2212_v33 }
 0x271   : > { %vm1106_vm9 = vmor %vm1104_vm8, %vm1105_vm7  ;;  %v1133_v13 = vor.u32 1.1754944e-38, %v1132_v2  ;;  %vm1131_vm14 = vcmp.eq.f32.partialorder %v1130_v4, 8.507059e+37 }
 0x272   : > { %v1101_v37 = vsub.f32 1.0, %v1100_v35 }
 0x274   : > { %v1102_v43 = vmul.f32 %v2212_v33, %v1101_v37 }
 0x275   : > { %v2214_v50 = vpop.eup %2213 }
 0x276   : > { %v1122_v51 = vmul.f32 %v2214_v50, %v1120_v30  ;;  %v1103_v53 = vadd.f32 %v2212_v33, %v1102_v43  ;;  %vm1127_vm11 = vweird.f32 %v2214_v50 }
 0x277   : > { %vm1128_vm13 = vmor %vm1126_vm12, %vm1127_vm11 }
 0x278   : > { %v1123_v10 = vsub.f32 1.0, %v1122_v51  ;;  %v1107_v11 = vsel %vm1106_vm9, %v2212_v33, %v1103_v53 }
 0x279   : > { %v1112_v17 = vsel %vm1109_vm10, %v1111_v25, %v1107_v11 }
 0x27a   : > { %v1124_v63 = vmul.f32 %v2214_v50, %v1123_v10  ;;  %v1136_v3 = vmul.f32 %v1112_v17, %v1091_v54 }
 0x27c   : > { %v1125_v5 = vadd.f32 %v2214_v50, %v1124_v63  ;;  %v1139_v9 = vadd.f32 %v1137_v61, %v1136_v3 }
 0x27e   : > { %v1129_v15 = vsel %vm1128_vm13, %v2214_v50, %v1125_v5  ;;  %2215 = vtanh.f32 %v1139_v9 }
 0x27f   : > { %v1134_v42 = vsel %vm1131_vm14, %v1133_v13, %v1129_v15 }
 0x280   : > { %v1141_v6 = vsub.f32 1.0, %v1134_v42  ;;  %v1143_v21 = vmul.f32 %v1134_v42, %v3062_v55  ;;  %v680_v55 = vrot.slane %v3005_v47, 6 }
 0x282   : > { %v1207_v39 = vrot.slane %v680_v55, 2 }
 0x284   : > { %v2216_v18 = vpop.eup %2215 }
 0x285   : > { %v1142_v28 = vmul.f32 %v2216_v18, %v1141_v6 }
 0x287   : > { %v3097_v29 = vadd.f32 %v1143_v21, %v1142_v28 }
 0x289   : > { %2026 = vst [vmem:[%s3027_s8 + $0x4] sm:$0x3] %v3097_v29  ;;  %v1147_v22 = vpack.c.bf16 %v3097_v29, %v3097_v29 }
 0x28b   : > { %1156 = vmatmul.bf16.vlgmr.msrb.gmra.mxu0 %v1147_v22  ;;  %1169 = vmatmul.bf16.vlgmr.msrb.gmra.mxu1 %v1147_v22 }
 0x28c   : > { %1182 = vmatmul.bf16.vlgmr.msrb.gmra.mxu2 %v1147_v22  ;;  %1360 = vmatpush.bf16.msrb.mxu0 %v2848_v8 }
 0x28d   : > { %1427 = vmatpush.bf16.msrb.mxu1 %v2766_v7  ;;  %1440 = vmatpush.bf16.msrb.mxu2 %v2791_v32 }
 0x290   : > { %1361 = vmatpush.bf16.msrb.mxu0 %v2864_v19 }
 0x291   : > { %1428 = vmatpush.bf16.msrb.mxu1 %v2775_v16  ;;  %1441 = vmatpush.bf16.msrb.mxu2 %v2808_v46 }
 0x294   : > { %1362 = vmatpush.bf16.msrb.mxu0 %v2882_v27 }
 0x295   : > { %1429 = vmatpush.bf16.msrb.mxu1 %v2789_v31  ;;  %1442 = vmatpush.bf16.msrb.mxu2 %v2824_v58 }
 0x298   : > { %1363 = vmatpush.bf16.msrb.mxu0 %v2896_v36 }
 0x299   : > { %1430 = vmatpush.bf16.msrb.mxu1 %v2806_v45  ;;  %1443 = vmatpush.bf16.msrb.mxu2 %v2841_v1 }
 0x29c   : > { %1364 = vmatpush.bf16.msrb.mxu0 %v2907_v41 }
 0x29d   : > { %1431 = vmatpush.bf16.msrb.mxu1 %v2822_v57  ;;  %1444 = vmatpush.bf16.msrb.mxu2 %v2859_v14 }
 0x2a0   : > { %1365 = vmatpush.bf16.msrb.mxu0 %v2915_v44 }
 0x2a1   : > { %1432 = vmatpush.bf16.msrb.mxu1 %v2839_v0  ;;  %1445 = vmatpush.bf16.msrb.mxu2 %v2876_v24 }
 0x2a4   : > { %1366 = vmatpush.bf16.msrb.mxu0 %v2924_v49 }
 0x2a5   : > { %1433 = vmatpush.bf16.msrb.mxu1 %v2856_v12  ;;  %1446 = vmatpush.bf16.msrb.mxu2 %v2892_v34 }
 0x2a8   : > { %1367 = vmatpush.bf16.msrb.mxu0 %v2932_v52 }
 0x2a9   : > { %1434 = vmatpush.bf16.msrb.mxu1 %v2873_v23  ;;  %1447 = vmatpush.bf16.msrb.mxu2 %v2904_v40 }
 0x308   : > { %v1157_v30 = vpop.f32.mrf.mxu0  ;;  %v1170_v33 = vpop.f32.mrf.mxu1 }
 0x309   : > { %v1158_v35 = vadd.f32 %v1157_v30, %v2989_v20  ;;  %v1171_v37 = vadd.f32 %v1170_v33, %v3000_v38 }
 0x30b   : > { %v1187_v43 = vadd.f32 %v1158_v35, %v680_v55  ;;  %v1209_v48 = vadd.f32 %v1207_v39, %v1171_v37  ;;  %v1230_v39 = vrot.slane %v680_v55, 4 }
 0x30d   : > { %v2027_v50 = vmul.f32 -1.442695, %v1187_v43  ;;  %v2028_v51 = vmul.f32 -1.442695, %v1209_v48 }
 0x30f   : > { %2217 = vpow2.f32 %v2027_v50  ;;  %v1183_v53 = vpop.f32.mrf.mxu2 }
 0x310   : > { %2219 = vpow2.f32 %v2028_v51  ;;  %v1159_v25 = vpop.f32.mrf.mxu0  ;;  %v1172_v10 = vpop.f32.mrf.mxu1  ;;  %v1184_v21 = vadd.f32 %v1183_v53, %v3020_v26 }
 0x315   : > { %v2218_v54 = vpop.eup %2217 }
 0x316   : > { %v2220_v11 = vpop.eup %2219  ;;  %v1191_v17 = vadd.f32 1.0, %v2218_v54 }
 0x317   : > { %v1213_v47 = vadd.f32 1.0, %v2220_v11  ;;  %v1185_v61 = vpop.f32.mrf.mxu2 }
 0x318   : > { %2221 = vrcp.f32 %v1191_v17  ;;  %v1203_v13 = vand.u32 2147483648, %v1191_v17  ;;  %v1201_v42 = vand.u32 2147483647, %v1191_v17  ;;  %vm1197_vm0 = vweird.f32 %v1191_v17 }
 0x319   : > { %2223 = vrcp.f32 %v1213_v47  ;;  %v1225_v35 = vand.u32 2147483648, %v1213_v47  ;;  %vm1219_vm4 = vweird.f32 %v1213_v47  ;;  %v1223_v43 = vand.u32 2147483647, %v1213_v47 }
 0x31a   : > { %v1204_v28 = vor.u32 1.1754944e-38, %v1203_v13  ;;  %vm1202_vm2 = vcmp.eq.f32.partialorder %v1201_v42, 8.507059e+37 }
 0x31b   : > { %v1226_v51 = vor.u32 1.1754944e-38, %v1225_v35  ;;  %vm1224_vm6 = vcmp.eq.f32.partialorder %v1223_v43, 8.507059e+37 }
 0x31e   : > { %v2222_v63 = vpop.eup %2221 }
 0x31f   : > { %v2224_v2 = vpop.eup %2223  ;;  %v1193_v3 = vmul.f32 %v2222_v63, %v1191_v17  ;;  %vm1198_vm15 = vweird.f32 %v2222_v63 }
 0x320   : > { %v1215_v4 = vmul.f32 %v2224_v2, %v1213_v47  ;;  %vm1199_vm1 = vmor %vm1197_vm0, %vm1198_vm15  ;;  %vm1220_vm3 = vweird.f32 %v2224_v2 }
 0x321   : > { %v1194_v5 = vsub.f32 1.0, %v1193_v3  ;;  %vm1221_vm5 = vmor %vm1219_vm4, %vm1220_vm3 }
 0x322   : > { %v1216_v9 = vsub.f32 1.0, %v1215_v4 }
 0x323   : > { %v1195_v15 = vmul.f32 %v2222_v63, %v1194_v5 }
 0x324   : > { %v1217_v6 = vmul.f32 %v2224_v2, %v1216_v9 }
 0x325   : > { %v1196_v18 = vadd.f32 %v2222_v63, %v1195_v15 }
 0x326   : > { %v1218_v33 = vadd.f32 %v2224_v2, %v1217_v6 }
 0x327   : > { %v1200_v22 = vsel %vm1199_vm1, %v2222_v63, %v1196_v18 }
 0x328   : > { %v1205_v30 = vsel %vm1202_vm2, %v1204_v28, %v1200_v22  ;;  %v1222_v50 = vsel %vm1221_vm5, %v2224_v2, %v1218_v33  ;;  %v1323_v33 = vrot.slane %v3009_v56, 4 }
 0x329   : > { %v1229_v37 = vmul.f32 %v1205_v30, %v1184_v21  ;;  %v1227_v25 = vsel %vm1224_vm6, %v1226_v51, %v1222_v50 }
 0x32a   : > { %v1234_v10 = vsub.f32 1.0, %v1227_v25  ;;  %v1236_v11 = vmul.f32 %v1227_v25, %v3097_v29 }
 0x32b   : > { %v1232_v48 = vadd.f32 %v1230_v39, %v1229_v37 }
 0x32d   : > { %2225 = vtanh.f32 %v1232_v48 }
 0x333   : > { %v2226_v53 = vpop.eup %2225 }
 0x334   : > { %v1235_v54 = vmul.f32 %v2226_v53, %v1234_v10 }
 0x336   : > { %v3132_v17 = vadd.f32 %v1236_v11, %v1235_v54 }
 0x338   : > { %2029 = vst [vmem:[%s3027_s8 + $0x6] sm:$0x3] %v3132_v17  ;;  %v1240_v55 = vpack.c.bf16 %v3132_v17, %v3132_v17 }
 0x33a   : > { %1249 = vmatmul.bf16.vlgmr.msrb.gmra.mxu3 %v1240_v55  ;;  %1262 = vmatmul.bf16.vlgmr.msra.gmra.mxu0 %v1240_v55 }
 0x33b   : > { %1275 = vmatmul.bf16.vlgmr.msra.gmra.mxu1 %v1240_v55  ;;  %1453 = vmatpush.bf16.msrb.mxu3 %v2848_v8 }
 0x33c   : > { %1520 = vmatpush.bf16.msra.mxu0 %v2766_v7  ;;  %1533 = vmatpush.bf16.msra.mxu1 %v2791_v32 }
 0x33f   : > { %1454 = vmatpush.bf16.msrb.mxu3 %v2864_v19 }
 0x340   : > { %1521 = vmatpush.bf16.msra.mxu0 %v2775_v16  ;;  %1534 = vmatpush.bf16.msra.mxu1 %v2808_v46 }
 0x343   : > { %1455 = vmatpush.bf16.msrb.mxu3 %v2882_v27 }
 0x344   : > { %1522 = vmatpush.bf16.msra.mxu0 %v2789_v31  ;;  %1535 = vmatpush.bf16.msra.mxu1 %v2824_v58  ;;  %v1300_v31 = vrot.slane %v3009_v56, 2 }
 0x347   : > { %1456 = vmatpush.bf16.msrb.mxu3 %v2896_v36 }
 0x348   : > { %1523 = vmatpush.bf16.msra.mxu0 %v2806_v45  ;;  %1536 = vmatpush.bf16.msra.mxu1 %v2841_v1 }
 0x34b   : > { %1457 = vmatpush.bf16.msrb.mxu3 %v2907_v41 }
 0x34c   : > { %1524 = vmatpush.bf16.msra.mxu0 %v2822_v57  ;;  %1537 = vmatpush.bf16.msra.mxu1 %v2859_v14 }
 0x34f   : > { %1458 = vmatpush.bf16.msrb.mxu3 %v2915_v44 }
 0x350   : > { %1525 = vmatpush.bf16.msra.mxu0 %v2839_v0  ;;  %1538 = vmatpush.bf16.msra.mxu1 %v2876_v24 }
 0x353   : > { %1459 = vmatpush.bf16.msrb.mxu3 %v2924_v49 }
 0x354   : > { %1526 = vmatpush.bf16.msra.mxu0 %v2856_v12  ;;  %1539 = vmatpush.bf16.msra.mxu1 %v2892_v34 }
 0x357   : > { %1460 = vmatpush.bf16.msrb.mxu3 %v2932_v52 }
 0x358   : > { %1527 = vmatpush.bf16.msra.mxu0 %v2873_v23  ;;  %1540 = vmatpush.bf16.msra.mxu1 %v2904_v40 }
 0x3b7   : > { %v1263_v7 = vpop.f32.mrf.mxu0 }
 0x3b8   : > { %v1264_v16 = vadd.f32 %v1263_v7, %v3000_v38  ;;  %v1276_v32 = vpop.f32.mrf.mxu1 }
 0x3b9   : > { %v1277_v18 = vadd.f32 %v1276_v32, %v3020_v26 }
 0x3ba   : > { %v1302_v45 = vadd.f32 %v1300_v31, %v1264_v16 }
 0x3bc   : > { %v2031_v46 = vmul.f32 -1.442695, %v1302_v45 }
 0x3bd   : > { %v1250_v57 = vpop.f32.mrf.mxu3 }
 0x3be   : > { %2227 = vpow2.f32 %v2031_v46  ;;  %v1251_v58 = vadd.f32 %v1250_v57, %v2989_v20 }
 0x3bf   : > { %v1265_v0 = vpop.f32.mrf.mxu0 }
 0x3c0   : > { %v1280_v1 = vadd.f32 %v1251_v58, %v3009_v56  ;;  %v1278_v12 = vpop.f32.mrf.mxu1 }
 0x3c2   : > { %v2030_v14 = vmul.f32 -1.442695, %v1280_v1 }
 0x3c4   : > { %v2228_v23 = vpop.eup %2227  ;;  %2229 = vpow2.f32 %v2030_v14 }
 0x3c5   : > { %v1306_v24 = vadd.f32 1.0, %v2228_v23  ;;  %v1252_v34 = vpop.f32.mrf.mxu3 }
 0x3c7   : > { %2231 = vrcp.f32 %v1306_v24  ;;  %v1318_v30 = vand.u32 2147483648, %v1306_v24  ;;  %vm1312_vm12 = vweird.f32 %v1306_v24  ;;  %v1316_v37 = vand.u32 2147483647, %v1306_v24 }
 0x3c9   : > { %v1319_v48 = vor.u32 1.1754944e-38, %v1318_v30  ;;  %vm1317_vm14 = vcmp.eq.f32.partialorder %v1316_v37, 8.507059e+37 }
 0x3ca   : > { %v2230_v40 = vpop.eup %2229 }
 0x3cb   : > { %v1284_v29 = vadd.f32 1.0, %v2230_v40 }
 0x3cd   : > { %2233 = vrcp.f32 %v1284_v29  ;;  %v2232_v47 = vpop.eup %2231  ;;  %v1296_v5 = vand.u32 2147483648, %v1284_v29  ;;  %v1294_v13 = vand.u32 2147483647, %v1284_v29  ;;  %vm1290_vm8 = vweird.f32 %v1284_v29 }
 0x3ce   : > { %v1308_v61 = vmul.f32 %v2232_v47, %v1306_v24  ;;  %vm1313_vm11 = vweird.f32 %v2232_v47 }
 0x3cf   : > { %v1297_v6 = vor.u32 1.1754944e-38, %v1296_v5  ;;  %vm1295_vm10 = vcmp.eq.f32.partialorder %v1294_v13, 8.507059e+37  ;;  %vm1314_vm13 = vmor %vm1312_vm12, %vm1313_vm11 }
 0x3d0   : > { %v1309_v3 = vsub.f32 1.0, %v1308_v61 }
 0x3d2   : > { %v1310_v15 = vmul.f32 %v2232_v47, %v1309_v3 }
 0x3d3   : > { %v2234_v63 = vpop.eup %2233 }
 0x3d4   : > { %v1286_v2 = vmul.f32 %v2234_v63, %v1284_v29  ;;  %vm1291_vm7 = vweird.f32 %v2234_v63  ;;  %v1311_v22 = vadd.f32 %v2232_v47, %v1310_v15 }
 0x3d5   : > { %vm1292_vm9 = vmor %vm1290_vm8, %vm1291_vm7 }
 0x3d6   : > { %v1287_v4 = vsub.f32 1.0, %v1286_v2  ;;  %v1315_v43 = vsel %vm1314_vm13, %v2232_v47, %v1311_v22 }
 0x3d7   : > { %v1320_v50 = vsel %vm1317_vm14, %v1319_v48, %v1315_v43 }
 0x3d8   : > { %v1288_v9 = vmul.f32 %v2234_v63, %v1287_v4  ;;  %v1327_v51 = vsub.f32 1.0, %v1320_v50  ;;  %v1329_v53 = vmul.f32 %v1320_v50, %v3132_v17  ;;  %v685_v17 = vrot.slane %v3012_v59, 2 }
 0x3da   : > { %v1289_v42 = vadd.f32 %v2234_v63, %v1288_v9  ;;  %v1416_v5 = vrot.slane %v685_v17, 4 }
 0x3dc   : > { %v1293_v28 = vsel %vm1292_vm9, %v2234_v63, %v1289_v42 }
 0x3dd   : > { %v1298_v21 = vsel %vm1295_vm10, %v1297_v6, %v1293_v28 }
 0x3de   : > { %v1322_v35 = vmul.f32 %v1298_v21, %v1277_v18 }
 0x3e0   : > { %v1325_v39 = vadd.f32 %v1323_v33, %v1322_v35 }
 0x3e2   : > { %2235 = vtanh.f32 %v1325_v39  ;;  %v688_v39 = vrot.slane %v3015_v60, 4 }
 0x3e8   : > { %v2236_v25 = vpop.eup %2235 }
 0x3e9   : > { %v1328_v10 = vmul.f32 %v2236_v25, %v1327_v51 }
 0x3eb   : > { %v3169_v54 = vadd.f32 %v1329_v53, %v1328_v10  ;;  %v1486_v10 = vrot.slane %v688_v39, 2 }
 0x3ed   : > { %2032 = vst [vmem:[%s3027_s8 + $0x8] sm:$0x3] %v3169_v54  ;;  %v1333_v56 = vpack.c.bf16 %v3169_v54, %v3169_v54 }
 0x3ef   : > { %1342 = vmatmul.bf16.vlgmr.msra.gmra.mxu2 %v1333_v56  ;;  %1355 = vmatmul.bf16.vlgmr.msra.gmra.mxu3 %v1333_v56 }
 0x3f0   : > { %1368 = vmatmul.bf16.vlgmr.msrb.gmra.mxu0 %v1333_v56  ;;  %1546 = vmatpush.bf16.msra.mxu2 %v2848_v8 }
 0x3f4   : > { %1547 = vmatpush.bf16.msra.mxu2 %v2864_v19 }
 0x3f8   : > { %1548 = vmatpush.bf16.msra.mxu2 %v2882_v27  ;;  %v1393_v27 = vrot.slane %v685_v17, 2 }
 0x3fc   : > { %1549 = vmatpush.bf16.msra.mxu2 %v2896_v36 }
 0x400   : > { %1550 = vmatpush.bf16.msra.mxu2 %v2907_v41 }
 0x404   : > { %1551 = vmatpush.bf16.msra.mxu2 %v2915_v44 }
 0x408   : > { %1552 = vmatpush.bf16.msra.mxu2 %v2924_v49 }
 0x40c   : > { %1553 = vmatpush.bf16.msra.mxu2 %v2932_v52 }
 0x46d   : > { %v1369_v11 = vpop.f32.mrf.mxu0 }
 0x46e   : > { %v1370_v61 = vadd.f32 %v1369_v11, %v3020_v26 }
 0x472   : > { %v1343_v55 = vpop.f32.mrf.mxu2  ;;  %v1356_v7 = vpop.f32.mrf.mxu3 }
 0x473   : > { %v1344_v8 = vadd.f32 %v1343_v55, %v2989_v20  ;;  %v1357_v19 = vadd.f32 %v1356_v7, %v3000_v38 }
 0x475   : > { %v1373_v16 = vadd.f32 %v1344_v8, %v685_v17  ;;  %v1395_v36 = vadd.f32 %v1393_v27, %v1357_v19  ;;  %v1371_v31 = vpop.f32.mrf.mxu0 }
 0x477   : > { %v2033_v41 = vmul.f32 -1.442695, %v1373_v16  ;;  %v2034_v32 = vmul.f32 -1.442695, %v1395_v36 }
 0x479   : > { %2237 = vpow2.f32 %v2033_v41 }
 0x47a   : > { %2239 = vpow2.f32 %v2034_v32  ;;  %v1345_v44 = vpop.f32.mrf.mxu2  ;;  %v1358_v49 = vpop.f32.mrf.mxu3 }
 0x47f   : > { %v2238_v52 = vpop.eup %2237 }
 0x480   : > { %v2240_v45 = vpop.eup %2239  ;;  %v1377_v46 = vadd.f32 1.0, %v2238_v52 }
 0x481   : > { %v1399_v59 = vadd.f32 1.0, %v2240_v45 }
 0x482   : > { %2241 = vrcp.f32 %v1377_v46  ;;  %v1389_v14 = vand.u32 2147483648, %v1377_v46  ;;  %v1387_v34 = vand.u32 2147483647, %v1377_v46  ;;  %vm1383_vm0 = vweird.f32 %v1377_v46 }
 0x483   : > { %2243 = vrcp.f32 %v1399_v59  ;;  %v1411_v9 = vand.u32 2147483648, %v1399_v59  ;;  %vm1405_vm4 = vweird.f32 %v1399_v59  ;;  %v1409_v13 = vand.u32 2147483647, %v1399_v59 }
 0x484   : > { %v1390_v47 = vor.u32 1.1754944e-38, %v1389_v14  ;;  %vm1388_vm2 = vcmp.eq.f32.partialorder %v1387_v34, 8.507059e+37 }
 0x485   : > { %v1412_v6 = vor.u32 1.1754944e-38, %v1411_v9  ;;  %vm1410_vm6 = vcmp.eq.f32.partialorder %v1409_v13, 8.507059e+37  ;;  %v691_v9 = vrot.slane %v3018_v62, 6 }
 0x488   : > { %v2242_v57 = vpop.eup %2241 }
 0x489   : > { %v2244_v58 = vpop.eup %2243  ;;  %v1379_v0 = vmul.f32 %v2242_v57, %v1377_v46  ;;  %vm1384_vm15 = vweird.f32 %v2242_v57 }
 0x48a   : > { %v1401_v1 = vmul.f32 %v2244_v58, %v1399_v59  ;;  %vm1385_vm1 = vmor %vm1383_vm0, %vm1384_vm15  ;;  %vm1406_vm3 = vweird.f32 %v2244_v58 }
 0x48b   : > { %v1380_v12 = vsub.f32 1.0, %v1379_v0  ;;  %vm1407_vm5 = vmor %vm1405_vm4, %vm1406_vm3  ;;  %v1509_v0 = vrot.slane %v688_v39, 4 }
 0x48c   : > { %v1402_v23 = vsub.f32 1.0, %v1401_v1 }
 0x48d   : > { %v1381_v24 = vmul.f32 %v2242_v57, %v1380_v12 }
 0x48e   : > { %v1403_v40 = vmul.f32 %v2244_v58, %v1402_v23 }
 0x48f   : > { %v1382_v29 = vadd.f32 %v2242_v57, %v1381_v24 }
 0x490   : > { %v1404_v3 = vadd.f32 %v2244_v58, %v1403_v40 }
 0x491   : > { %v1386_v63 = vsel %vm1385_vm1, %v2242_v57, %v1382_v29 }
 0x492   : > { %v1391_v2 = vsel %vm1388_vm2, %v1390_v47, %v1386_v63  ;;  %v1408_v42 = vsel %vm1407_vm5, %v2244_v58, %v1404_v3 }
 0x493   : > { %v1415_v4 = vmul.f32 %v1391_v2, %v1370_v61  ;;  %v1413_v18 = vsel %vm1410_vm6, %v1412_v6, %v1408_v42 }
 0x494   : > { %v1420_v28 = vsub.f32 1.0, %v1413_v18  ;;  %v1422_v30 = vmul.f32 %v1413_v18, %v3169_v54  ;;  %v1579_v18 = vrot.slane %v691_v9, 2 }
 0x495   : > { %v1418_v15 = vadd.f32 %v1416_v5, %v1415_v4 }
 0x497   : > { %2245 = vtanh.f32 %v1418_v15 }
 0x49d   : > { %v2246_v21 = vpop.eup %2245 }
 0x49e   : > { %v1421_v22 = vmul.f32 %v2246_v21, %v1420_v28 }
 0x4a0   : > { %v3188_v33 = vadd.f32 %v1422_v30, %v1421_v22 }
 0x4a2   : > { %2035 = vst [vmem:[%s3027_s8 + $0xa] sm:$0x3] %v3188_v33  ;;  %v1426_v35 = vpack.c.bf16 %v3188_v33, %v3188_v33 }
 0x4a4   : > { %1435 = vmatmul.bf16.vlgmr.msrb.gmra.mxu1 %v1426_v35  ;;  %1448 = vmatmul.bf16.vlgmr.msrb.gmra.mxu2 %v1426_v35 }
 0x4a5   : > { %1461 = vmatmul.bf16.vlgmr.msrb.gmra.mxu3 %v1426_v35 }
 0x521   : > { %v1436_v37 = vpop.f32.mrf.mxu1 }
 0x522   : > { %v1437_v43 = vadd.f32 %v1436_v37, %v2989_v20 }
 0x524   : > { %v1466_v48 = vadd.f32 %v1437_v43, %v688_v39 }
 0x526   : > { %v2036_v50 = vmul.f32 -1.442695, %v1466_v48 }
 0x527   : > { %v1449_v51 = vpop.f32.mrf.mxu2 }
 0x528   : > { %2247 = vpow2.f32 %v2036_v50  ;;  %v1450_v25 = vadd.f32 %v1449_v51, %v3000_v38  ;;  %v1462_v53 = vpop.f32.mrf.mxu3 }
 0x529   : > { %v1438_v54 = vpop.f32.mrf.mxu1  ;;  %v1463_v59 = vadd.f32 %v1462_v53, %v3020_v26 }
 0x52a   : > { %v1488_v56 = vadd.f32 %v1486_v10, %v1450_v25 }
 0x52c   : > { %v2037_v11 = vmul.f32 -1.442695, %v1488_v56 }
 0x52e   : > { %v2248_v17 = vpop.eup %2247  ;;  %2249 = vpow2.f32 %v2037_v11 }
 0x52f   : > { %v1470_v55 = vadd.f32 1.0, %v2248_v17  ;;  %v1451_v7 = vpop.f32.mrf.mxu2 }
 0x530   : > { %v1464_v8 = vpop.f32.mrf.mxu3 }
 0x531   : > { %2251 = vrcp.f32 %v1470_v55  ;;  %v1482_v31 = vand.u32 2147483648, %v1470_v55  ;;  %v1480_v32 = vand.u32 2147483647, %v1470_v55  ;;  %vm1476_vm8 = vweird.f32 %v1470_v55 }
 0x533   : > { %v1483_v45 = vor.u32 1.1754944e-38, %v1482_v31  ;;  %vm1481_vm10 = vcmp.eq.f32.partialorder %v1480_v32, 8.507059e+37  ;;  %v1602_v31 = vrot.slane %v691_v9, 4 }
 0x534   : > { %v2250_v60 = vpop.eup %2249 }
 0x535   : > { %v1492_v19 = vadd.f32 1.0, %v2250_v60 }
 0x537   : > { %v2252_v27 = vpop.eup %2251  ;;  %2253 = vrcp.f32 %v1492_v19  ;;  %v1504_v12 = vand.u32 2147483648, %v1492_v19  ;;  %v1502_v23 = vand.u32 2147483647, %v1492_v19  ;;  %vm1498_vm12 = vweird.f32 %v1492_v19 }
 0x538   : > { %v1472_v16 = vmul.f32 %v2252_v27, %v1470_v55  ;;  %vm1477_vm7 = vweird.f32 %v2252_v27 }
 0x539   : > { %vm1478_vm9 = vmor %vm1476_vm8, %vm1477_vm7  ;;  %v1505_v40 = vor.u32 1.1754944e-38, %v1504_v12  ;;  %vm1503_vm14 = vcmp.eq.f32.partialorder %v1502_v23, 8.507059e+37 }
 0x53a   : > { %v1473_v36 = vsub.f32 1.0, %v1472_v16 }
 0x53c   : > { %v1474_v41 = vmul.f32 %v2252_v27, %v1473_v36 }
 0x53d   : > { %v2254_v44 = vpop.eup %2253 }
 0x53e   : > { %v1494_v49 = vmul.f32 %v2254_v44, %v1492_v19  ;;  %v1475_v52 = vadd.f32 %v2252_v27, %v1474_v41  ;;  %vm1499_vm11 = vweird.f32 %v2254_v44 }
 0x53f   : > { %vm1500_vm13 = vmor %vm1498_vm12, %vm1499_vm11 }
 0x540   : > { %v1495_v46 = vsub.f32 1.0, %v1494_v49  ;;  %v1479_v57 = vsel %vm1478_vm9, %v2252_v27, %v1475_v52 }
 0x541   : > { %v1484_v58 = vsel %vm1481_vm10, %v1483_v45, %v1479_v57 }
 0x542   : > { %v1496_v1 = vmul.f32 %v2254_v44, %v1495_v46  ;;  %v1508_v14 = vmul.f32 %v1484_v58, %v1463_v59 }
 0x544   : > { %v1497_v24 = vadd.f32 %v2254_v44, %v1496_v1  ;;  %v1511_v34 = vadd.f32 %v1509_v0, %v1508_v14 }
 0x546   : > { %v1501_v29 = vsel %vm1500_vm13, %v2254_v44, %v1497_v24  ;;  %2255 = vtanh.f32 %v1511_v34 }
 0x547   : > { %v1506_v47 = vsel %vm1503_vm14, %v1505_v40, %v1501_v29 }
 0x548   : > { %v1513_v61 = vsub.f32 1.0, %v1506_v47  ;;  %v1515_v3 = vmul.f32 %v1506_v47, %v3188_v33 }
 0x54c   : > { %v2256_v63 = vpop.eup %2255 }
 0x54d   : > { %v1514_v2 = vmul.f32 %v2256_v63, %v1513_v61 }
 0x54f   : > { %v3199_v4 = vadd.f32 %v1515_v3, %v1514_v2 }
 0x551   : > { %2038 = vst [vmem:[%s3027_s8 + $0xc] sm:$0x3] %v3199_v4  ;;  %v1519_v5 = vpack.c.bf16 %v3199_v4, %v3199_v4 }
 0x553   : > { %1528 = vmatmul.bf16.vlgmr.msra.gmra.mxu0 %v1519_v5  ;;  %1541 = vmatmul.bf16.vlgmr.msra.gmra.mxu1 %v1519_v5 }
 0x554   : > { %1554 = vmatmul.bf16.vlgmr.msra.gmra.mxu2 %v1519_v5 }
 0x5d0   : > { %v1529_v13 = vpop.f32.mrf.mxu0  ;;  %v1542_v15 = vpop.f32.mrf.mxu1 }
 0x5d1   : > { %v1530_v42 = vadd.f32 %v1529_v13, %v2989_v20  ;;  %v1543_v6 = vadd.f32 %v1542_v15, %v3000_v38 }
 0x5d3   : > { %v1559_v28 = vadd.f32 %v1530_v42, %v691_v9  ;;  %v1581_v21 = vadd.f32 %v1579_v18, %v1543_v6 }
 0x5d5   : > { %v2039_v22 = vmul.f32 -1.442695, %v1559_v28  ;;  %v2040_v30 = vmul.f32 -1.442695, %v1581_v21 }
 0x5d7   : > { %2257 = vpow2.f32 %v2039_v22  ;;  %v1555_v33 = vpop.f32.mrf.mxu2 }
 0x5d8   : > { %2259 = vpow2.f32 %v2040_v30  ;;  %v1531_v35 = vpop.f32.mrf.mxu0  ;;  %v1544_v37 = vpop.f32.mrf.mxu1  ;;  %v1556_v8 = vadd.f32 %v1555_v33, %v3020_v26 }
 0x5dd   : > { %v2258_v39 = vpop.eup %2257 }
 0x5de   : > { %v2260_v43 = vpop.eup %2259  ;;  %v1563_v48 = vadd.f32 1.0, %v2258_v39 }
 0x5df   : > { %v1585_v62 = vadd.f32 1.0, %v2260_v43  ;;  %v1557_v50 = vpop.f32.mrf.mxu2 }
 0x5e0   : > { %2261 = vrcp.f32 %v1563_v48  ;;  %v1575_v54 = vand.u32 2147483648, %v1563_v48  ;;  %v1573_v11 = vand.u32 2147483647, %v1563_v48  ;;  %vm1569_vm0 = vweird.f32 %v1563_v48 }
 0x5e1   : > { %2263 = vrcp.f32 %v1585_v62  ;;  %v1597_v16 = vand.u32 2147483648, %v1585_v62  ;;  %vm1591_vm4 = vweird.f32 %v1585_v62  ;;  %v1595_v41 = vand.u32 2147483647, %v1585_v62 }
 0x5e2   : > { %v1576_v7 = vor.u32 1.1754944e-38, %v1575_v54  ;;  %vm1574_vm2 = vcmp.eq.f32.partialorder %v1573_v11, 8.507059e+37 }
 0x5e3   : > { %v1598_v49 = vor.u32 1.1754944e-38, %v1597_v16  ;;  %vm1596_vm6 = vcmp.eq.f32.partialorder %v1595_v41, 8.507059e+37 }
 0x5e6   : > { %v2262_v20 = vpop.eup %2261 }
 0x5e7   : > { %v2264_v51 = vpop.eup %2263  ;;  %v1565_v38 = vmul.f32 %v2262_v20, %v1563_v48  ;;  %vm1570_vm15 = vweird.f32 %v2262_v20 }
 0x5e8   : > { %v1587_v25 = vmul.f32 %v2264_v51, %v1585_v62  ;;  %vm1571_vm1 = vmor %vm1569_vm0, %vm1570_vm15  ;;  %vm1592_vm3 = vweird.f32 %v2264_v51 }
 0x5e9   : > { %v1566_v10 = vsub.f32 1.0, %v1565_v38  ;;  %vm1593_vm5 = vmor %vm1591_vm4, %vm1592_vm3 }
 0x5ea   : > { %v1588_v53 = vsub.f32 1.0, %v1587_v25 }
 0x5eb   : > { %v1567_v56 = vmul.f32 %v2262_v20, %v1566_v10 }
 0x5ec   : > { %v1589_v17 = vmul.f32 %v2264_v51, %v1588_v53 }
 0x5ed   : > { %v1568_v55 = vadd.f32 %v2262_v20, %v1567_v56 }
 0x5ee   : > { %v1590_v27 = vadd.f32 %v2264_v51, %v1589_v17 }
 0x5ef   : > { %v1572_v60 = vsel %vm1571_vm1, %v2262_v20, %v1568_v55 }
 0x5f0   : > { %v1577_v19 = vsel %vm1574_vm2, %v1576_v7, %v1572_v60  ;;  %v1594_v44 = vsel %vm1593_vm5, %v2264_v51, %v1590_v27 }
 0x5f1   : > { %v1601_v36 = vmul.f32 %v1577_v19, %v1556_v8  ;;  %v1599_v26 = vsel %vm1596_vm6, %v1598_v49, %v1594_v44 }
 0x5f2   : > { %v1606_v52 = vsub.f32 1.0, %v1599_v26  ;;  %v1608_v59 = vmul.f32 %v1599_v26, %v3199_v4 }
 0x5f3   : > { %v1604_v32 = vadd.f32 %v1602_v31, %v1601_v36 }
 0x5f5   : > { %2265 = vtanh.f32 %v1604_v32 }
 0x5fb   : > { %v2266_v45 = vpop.eup %2265 }
 0x5fc   : > { %v1607_v46 = vmul.f32 %v2266_v45, %v1606_v52 }
 0x5fe   : > { %v1609_v57 = vadd.f32 %v1608_v59, %v1607_v46 }
 0x600   : > { %2041 = vst [vmem:[%s3027_s8 + $0xe] sm:$0x3] %v1609_v57 }
 0x601   : > { %1612 = vst [vmem:[#allocation2] sm:$0x3] %v1609_v57 }
 0x602   : > { %2444 = shalt.err (!%p2441_p0)
}
 0x603   : > { %s2545_s8 = smov 32   ;;  %s2546_s10 = smov 2   ;;  %1616 = vst [vmem:[%s495_s9] sm:$0x3] %v1609_v57 }
 0x604   : > { %2104 = dma.vmem_to_hbm [thread:$0]  (%p2642_p9), %s3220_s5, 256, %s1640_s6, %s1618_s18, %s2545_s8, %s2545_s8, %s2546_s10  }
 0x605   : > { %s1623_s29 = scalar_lea.sflag [#allocation14], %s2726_s0  ;;  %s2459_s14 = sshra.s32 %s3225_s12, 4  ;;  %s2460_s14 = int_to_ptr.hbm [resolvable:$true] %s2459_s14 }
 0x606   : > { %s2461_s7 = scalar_lea.hbm %s2460_s14, 2  ;;  %s2465_s27 = scalar_lea.hbm %s3327_s17, 4 }
 0x607   : > { %p2462_p1 = scmp.ne.s32.totalorder %s2460_s14, %s2461_s7  ;;  %p2466_p4 = scmp.lt.s32.totalorder %s2460_s14, %s3327_s17 }
 0x608   : > { %p2467_p5 = scmp.lt.s32.totalorder %s2465_s27, %s2461_s7 }
 0x609   : > { %p2463_p2 = pnand %p2462_p1, %p2642_p9 }
 0x60a   : > { %p2468_p6 = por %p2467_p5, %p2466_p4 }
 0x60b   : > { %p2464_p3 = pneg %p2463_p2 }
 0x60d   : > { %p2469_p7 = pnand %p2468_p6, %p2464_p3 }
 0x60f   : > { %2472 = shalt.err (!%p2469_p7)
}
 0x610   : > { %2105 = dma.vmem_to_hbm [thread:$0]  (%p2642_p9), %s3223_s30, 32, %s3225_s12, %s1623_s29  }
 0x611 PF: > { %s3329_s0 = sld [smem:[#allocation20_spill]]  ;;  %p2125_p8 = pnand %p1874_p12, %p2649_p11 }
 0x612   : > { %s3331_s6 = sld [smem:[#allocation23_spill]] }
 0x613   : > { %p2126_p10 = pneg %p2125_p8 }
 0x617   : > { %s1668_s9 = sand.u32 1, %s3329_s0  }
 0x618   : > { %s1669_s18 = scalar_lea.sflag [#allocation5], %s1668_s9 }
 0x619   : > { %2510 = dma.done.wait (%p2126_p10), %s1669_s18, 256  }
 0x61a   : > { %2512 = vsyncadd (%p2126_p10), %s1669_s18, 4294967040  ;;  %s1679_s13 = scalar_lea.sflag [#allocation14], %s1668_s9 }
 0x61b   : > { %2514 = dma.done.wait (%p2126_p10), %s1679_s13, 32  }
 0x61c   : > { %2516 = vsyncadd (%p2126_p10), %s1679_s13, 4294967264  ;;  %s33_s29 = sadd.s32 1, %s3331_s6   ;;  %s3332_s21 = sld [smem:[#allocation21_spill]] }
 0x61d   : > { %p30_p13 = scmp.ge.s32.totalorder %s33_s29, 4   ;;  %s3333_s26 = sld [smem:[#allocation26_spill]] }
 0x61e   : > { %s3334_s30 = sld [smem:[#allocation24_spill]]  ;;  %s3335_s24 = smov %s2523_s25 }
 0x61f   : > { %s3337_s27 = smov %s2535_s28 }
 0x620   :  { %32 = sbr.rel (!%p30_p13) target bundleno = 19 (0x13), region = 179 }
 0x622   : > { %s3336_s25 = smov %s3332_s21 }
 0x624   : > { %s3338_s28 = smov %s3334_s30 }
 0x625   :  { %1685 = vsyncpa [#allocation4], 1 }
 0x626   :  { %1687 = vsyncpa [#allocation4 + $0x1], 1 }
 0x627   :  { %1688 = vsyncpa [#allocation7], 1 }
 0x628   :  { %1690 = vsyncpa [#allocation7 + $0x1], 1 }
 0x629   :  { %1691 = vsyncpa [#allocation10], 1 }
 0x62a   :  { %1693 = vsyncpa [#allocation10 + $0x1], 1 }
 0x62b   :  { %1694 = vsyncpa [#allocation5], 1 }
 0x62c   :  { %1696 = vsyncpa [#allocation5 + $0x1], 1 }
 0x62d   :  { %1697 = vsyncpa [#allocation14], 1 }
 0x62e   :  { %1699 = vsyncpa [#allocation14 + $0x1], 1 }

</bundles_post_ra>
